<compile_context>
chip_gen: v7x
topology: tpu7x:2x2x1
jax: 0.10.0
libtpu: 0.0.40
codegen_flags: <defaults>
</compile_context>

<pallas_src>
import jax
import jax.numpy as jnp
import numpy as np
from jax.experimental import pallas as pl
from jax.experimental.pallas import tpu as pltpu  # noqa: F401  (TPU backend)

# ----------------------------- problem sizes ------------------------------
B = 2        # batch
S = 8        # decoder sequence length
SENC = 8     # encoder sequence length
D = 32       # d_model
H = 2        # num_heads
DEPTH = D // H
DFF = 64     # feed-forward hidden size
EPS = 1e-6


# ------------------------------ kernel body --------------------------------
def decoder_layer_kernel(
        x_ref, enc_ref, la_mask_ref, pad_mask_ref,
        w_qkv1_ref, b_qkv1_ref, wo1_ref, bo1_ref,
        w_qkv2_ref, b_qkv2_ref, wo2_ref, bo2_ref,
        w_ff1_ref, b_ff1_ref, w_ff2_ref, b_ff2_ref,
        ln_g_ref, ln_b_ref,
        out3_ref, attn1_ref, attn2_ref):
    # Flatten the batch into the sublane (row) dimension so every GEMM uses
    # B*S = 16 rows instead of 8 (better MXU occupancy, half the matmul issues).
    x_flat = x_ref[...].reshape(B * S, D)          # (16, 32)
    enc_flat = enc_ref[...].reshape(B * SENC, D)   # (16, 32)

    # Mask scaling hoisted: computed once, reused by every head.
    neg_la = la_mask_ref[...] * (-1e9)     # (B, S, S)
    neg_pad = pad_mask_ref[...] * (-1e9)   # (B, 1, SENC)

    ln_g = ln_g_ref[...]                   # (3, D)
    ln_b = ln_b_ref[...]                   # (3, D)

    def layer_norm(t, idx):
        mean = jnp.mean(t, axis=-1, keepdims=True)
        var = jnp.mean((t - mean) ** 2, axis=-1, keepdims=True)
        return ((t - mean) * jax.lax.rsqrt(var + EPS)
                * ln_g[idx:idx + 1] + ln_b[idx:idx + 1])

    scale = 1.0 / float(np.sqrt(DEPTH))

    def mha(xq_flat, xkv_flat, skv, neg_mask, w_qkv, b_qkv, wo, bo, attn_ref):
        """Multi-head attention batched over all B batch elements at once.

        xq_flat: (B*sq, D).  xkv_flat: (B*skv, D) or None for self-attention.
        w_qkv: fused (D, 3D) projection.  Writes per-head attention weights
        into attn_ref[:, h] and returns the (B*sq, D) projected output.
        """
        sq = xq_flat.shape[0] // B
        # One fused Q|K|V projection GEMM (plus a second one for the KV source
        # in the cross-attention case).
        qkv_q = jnp.dot(xq_flat, w_qkv,
                        preferred_element_type=jnp.float32) + b_qkv
        if xkv_flat is None:
            qkv_kv = qkv_q
        else:
            qkv_kv = jnp.dot(xkv_flat, w_qkv,
                             preferred_element_type=jnp.float32) + b_qkv

        head_outs = []
        for h in range(H):                           # static unrolled, H == 2
            qh = qkv_q[:, h * DEPTH:(h + 1) * DEPTH].reshape(B, sq, DEPTH)
            kh = qkv_kv[:, D + h * DEPTH:
                        D + (h + 1) * DEPTH].reshape(B, skv, DEPTH)
            vh = qkv_kv[:, 2 * D + h * DEPTH:
                        2 * D + (h + 1) * DEPTH].reshape(B, skv, DEPTH)
            # Contract the last dims directly -- no explicit K transpose.
            logits = jnp.einsum('bqd,bkd->bqk', qh, kh,
                                preferred_element_type=jnp.float32) * scale
            logits = logits + neg_mask
            logits = logits - jnp.max(logits, axis=-1, keepdims=True)
            e = jnp.exp(logits)
            denom = jnp.sum(e, axis=-1, keepdims=True)
            attn = e * pl.reciprocal(denom, approx=True)   # EUP, off the VALU
            attn_ref[:, h] = attn                          # (B, sq, skv)
            head_outs.append(jnp.einsum('bqk,bkd->bqd', attn, vh,
                                        preferred_element_type=jnp.float32))

        concat = jnp.concatenate(head_outs, axis=-1).reshape(B * sq, D)
        return jnp.dot(concat, wo, preferred_element_type=jnp.float32) + bo

    # --- block 1: masked self-attention + residual + layernorm
    a1 = mha(x_flat, None, S, neg_la,
             w_qkv1_ref[...], b_qkv1_ref[...], wo1_ref[...], bo1_ref[...],
             attn1_ref)
    out1 = layer_norm(a1 + x_flat, 0)

    # --- block 2: cross-attention over encoder output + residual + layernorm
    a2 = mha(out1, enc_flat, SENC, neg_pad,
             w_qkv2_ref[...], b_qkv2_ref[...], wo2_ref[...], bo2_ref[...],
             attn2_ref)
    out2 = layer_norm(a2 + out1, 1)

    # --- feed-forward network + residual + layernorm (batched over B*S rows)
    hid = jnp.dot(out2, w_ff1_ref[...],
                  preferred_element_type=jnp.float32) + b_ff1_ref[...]
    hid = jnp.maximum(hid, 0.0)
    ffn = jnp.dot(hid, w_ff2_ref[...],
                  preferred_element_type=jnp.float32) + b_ff2_ref[...]
    out3 = layer_norm(ffn + out2, 2)

    out3_ref[...] = out3.reshape(B, S, D)


# ------------------------------ host wrapper --------------------------------
def pack_params(params):
    """Fuse the 26 per-layer tensors into 14 lane-denser arrays."""
    (wq1, bq1, wk1, bk1, wv1, bv1, wo1, bo1,
     wq2, bq2, wk2, bk2, wv2, bv2, wo2, bo2,
     w_ff1, b_ff1, w_ff2, b_ff2,
     ln1_g, ln1_b, ln2_g, ln2_b, ln3_g, ln3_b) = params

    w_qkv1 = jnp.concatenate([wq1, wk1, wv1], axis=1)   # (D, 3D)
    b_qkv1 = jnp.concatenate([bq1, bk1, bv1], axis=1)   # (1, 3D)
    w_qkv2 = jnp.concatenate([wq2, wk2, wv2], axis=1)
    b_qkv2 = jnp.concatenate([bq2, bk2, bv2], axis=1)
    ln_g = jnp.concatenate([ln1_g, ln2_g, ln3_g], axis=0)   # (3, D)
    ln_b = jnp.concatenate([ln1_b, ln2_b, ln3_b], axis=0)   # (3, D)
    return (w_qkv1, b_qkv1, wo1, bo1,
            w_qkv2, b_qkv2, wo2, bo2,
            w_ff1, b_ff1, w_ff2, b_ff2,
            ln_g, ln_b)


@jax.jit
def decoder_layer(x, enc_output, look_ahead_mask, padding_mask, packed):
    # Masks broadcast over heads -> drop the singleton head dim before the call.
    la = look_ahead_mask[:, 0]     # (B, S, S)
    pad = padding_mask[:, 0]       # (B, 1, SENC)

    out_shape = (
        jax.ShapeDtypeStruct((B, S, D), jnp.float32),         # out3
        jax.ShapeDtypeStruct((B, H, S, S), jnp.float32),      # attn weights 1
        jax.ShapeDtypeStruct((B, H, S, SENC), jnp.float32),   # attn weights 2
    )
    # Single invocation: no grid, whole arrays resident in VMEM (tiny sizes).
    return pl.pallas_call(
        decoder_layer_kernel,
        out_shape=out_shape,
    )(x, enc_output, la, pad, *packed)


# --------------------------- pure-JAX reference -----------------------------
def reference(x, enc, la_mask, pad_mask, params):
    (wq1, bq1, wk1, bk1, wv1, bv1, wo1, bo1,
     wq2, bq2, wk2, bk2, wv2, bv2, wo2, bo2,
     w_ff1, b_ff1, w_ff2, b_ff2,
     ln1_g, ln1_b, ln2_g, ln2_b, ln3_g, ln3_b) = params

    def mha(xq, xkv, mask, wq, bq, wk, bk, wv, bv, wo, bo):
        bb, sq, _ = xq.shape
        skv = xkv.shape[1]
        q = xq @ wq + bq
        k = xkv @ wk + bk
        v = xkv @ wv + bv
        split = lambda t, s: t.reshape(bb, s, H, DEPTH).transpose(0, 2, 1, 3)
        q, k, v = split(q, sq), split(k, skv), split(v, skv)
        logits = jnp.einsum("bhqd,bhkd->bhqk", q, k) / jnp.sqrt(jnp.float32(DEPTH))
        logits = logits + mask * (-1e9)
        attn = jax.nn.softmax(logits, axis=-1)
        out = jnp.einsum("bhqk,bhkd->bhqd", attn, v)
        out = out.transpose(0, 2, 1, 3).reshape(bb, sq, D)
        return out @ wo + bo, attn

    def ln(t, g, b):
        m = t.mean(-1, keepdims=True)
        var = ((t - m) ** 2).mean(-1, keepdims=True)
        return (t - m) / jnp.sqrt(var + EPS) * g + b

    a1, aw1 = mha(x, x, la_mask, wq1, bq1, wk1, bk1, wv1, bv1, wo1, bo1)
    out1 = ln(a1 + x, ln1_g, ln1_b)
    a2, aw2 = mha(out1, enc, pad_mask, wq2, bq2, wk2, bk2, wv2, bv2, wo2, bo2)
    out2 = ln(a2 + out1, ln2_g, ln2_b)
    ffn = jnp.maximum(out2 @ w_ff1 + b_ff1, 0.0) @ w_ff2 + b_ff2
    out3 = ln(ffn + out2, ln3_g, ln3_b)
    return out3, aw1, aw2


# ------------------------------- main ---------------------------------------
def make_params(key):
    def dense(k, fan_in, fan_out):
        kw, kb = jax.random.split(k)
        w = jax.random.normal(kw, (fan_in, fan_out), jnp.float32) * 0.05
        b = jax.random.normal(kb, (1, fan_out), jnp.float32) * 0.05
        return w, b

    keys = jax.random.split(key, 16)
    params = []
    # mha1: wq, wk, wv, dense
    for i in range(4):
        params.extend(dense(keys[i], D, D))
    # mha2: wq, wk, wv, dense
    for i in range(4, 8):
        params.extend(dense(keys[i], D, D))
    # ffn
    params.extend(dense(keys[8], D, DFF))
    params.extend(dense(keys[9], DFF, D))
    # layernorms (gamma, beta)
    for i in range(3):
        g = 1.0 + 0.1 * jax.random.normal(keys[10 + i], (1, D), jnp.float32)
        bt = 0.1 * jax.random.normal(keys[13 + i], (1, D), jnp.float32)
        params.extend([g, bt])
    return tuple(params)


if __name__ == "__main__":
    key = jax.random.PRNGKey(0)
    kx, kenc, kp = jax.random.split(key, 3)

    x = jax.random.normal(kx, (B, S, D), jnp.float32)
    enc_output = jax.random.normal(kenc, (B, SENC, D), jnp.float32)

    # look-ahead mask: 1 above the diagonal (future positions masked)
    look_ahead_mask = jnp.broadcast_to(
        jnp.triu(jnp.ones((S, S), jnp.float32), k=1), (B, 1, S, S))
    # padding mask: mask out the last two encoder positions
    pad_row = jnp.concatenate(
        [jnp.zeros((SENC - 2,), jnp.float32), jnp.ones((2,), jnp.float32)])
    padding_mask = jnp.broadcast_to(pad_row.reshape(1, 1, 1, SENC),
                                    (B, 1, 1, SENC))

    params = make_params(kp)
    packed = pack_params(params)

    out3, aw1, aw2 = decoder_layer(x, enc_output, look_ahead_mask,
                                   padding_mask, packed)
    jax.block_until_ready((out3, aw1, aw2))

    # sanity check against pure-JAX reference (slightly relaxed tolerance to
    # accommodate the EUP approximate-reciprocal softmax denominator)
    r3, r1, r2 = reference(x, enc_output, look_ahead_mask, padding_mask, params)
    np.testing.assert_allclose(np.asarray(out3), np.asarray(r3), rtol=1e-3, atol=1e-3)
    np.testing.assert_allclose(np.asarray(aw1), np.asarray(r1), rtol=1e-3, atol=1e-3)
    np.testing.assert_allclose(np.asarray(aw2), np.asarray(r2), rtol=1e-3, atol=1e-3)

    print("KERNEL_OK")
</pallas_src>

<mosaic_0001>
module attributes {stable_mosaic.version = 11 : i64} {
  func.func @decoder_layer_kernel(%arg0: memref<2x8x32xf32, #tpu.memory_space<vmem>>, %arg1: memref<2x8x32xf32, #tpu.memory_space<vmem>>, %arg2: memref<2x8x8xf32, #tpu.memory_space<vmem>>, %arg3: memref<2x1x8xf32, #tpu.memory_space<vmem>>, %arg4: memref<32x96xf32, #tpu.memory_space<vmem>>, %arg5: memref<1x96xf32, #tpu.memory_space<vmem>>, %arg6: memref<32x32xf32, #tpu.memory_space<vmem>>, %arg7: memref<1x32xf32, #tpu.memory_space<vmem>>, %arg8: memref<32x96xf32, #tpu.memory_space<vmem>>, %arg9: memref<1x96xf32, #tpu.memory_space<vmem>>, %arg10: memref<32x32xf32, #tpu.memory_space<vmem>>, %arg11: memref<1x32xf32, #tpu.memory_space<vmem>>, %arg12: memref<32x64xf32, #tpu.memory_space<vmem>>, %arg13: memref<1x64xf32, #tpu.memory_space<vmem>>, %arg14: memref<64x32xf32, #tpu.memory_space<vmem>>, %arg15: memref<1x32xf32, #tpu.memory_space<vmem>>, %arg16: memref<3x32xf32, #tpu.memory_space<vmem>>, %arg17: memref<3x32xf32, #tpu.memory_space<vmem>>, %arg18: memref<2x8x32xf32, #tpu.memory_space<vmem>>, %arg19: memref<2x2x8x8xf32, #tpu.memory_space<vmem>>, %arg20: memref<2x2x8x8xf32, #tpu.memory_space<vmem>>) attributes {dimension_semantics = [], scalar_prefetch = 0 : i64, scratch_operands = 0 : i64, tpu.core_type = #tpu.core_type<tc>} {
    %c0 = arith.constant 0 : index
    %c0_0 = arith.constant 0 : index
    %c0_1 = arith.constant 0 : index
    %0 = vector.load %arg0[%c0, %c0_0, %c0_1] : memref<2x8x32xf32, #tpu.memory_space<vmem>>, vector<2x8x32xf32>
    %1 = vector.shape_cast %0 : vector<2x8x32xf32> to vector<16x32xf32>
    %c0_2 = arith.constant 0 : index
    %c0_3 = arith.constant 0 : index
    %c0_4 = arith.constant 0 : index
    %2 = vector.load %arg1[%c0_2, %c0_3, %c0_4] : memref<2x8x32xf32, #tpu.memory_space<vmem>>, vector<2x8x32xf32>
    %3 = vector.shape_cast %2 : vector<2x8x32xf32> to vector<16x32xf32>
    %c0_5 = arith.constant 0 : index
    %c0_6 = arith.constant 0 : index
    %c0_7 = arith.constant 0 : index
    %4 = vector.load %arg2[%c0_5, %c0_6, %c0_7] : memref<2x8x8xf32, #tpu.memory_space<vmem>>, vector<2x8x8xf32>
    %cst = arith.constant -1.000000e+09 : f32
    %5 = vector.broadcast %cst : f32 to vector<2x8x8xf32>
    %6 = arith.mulf %4, %5 : vector<2x8x8xf32>
    %c0_8 = arith.constant 0 : index
    %c0_9 = arith.constant 0 : index
    %c0_10 = arith.constant 0 : index
    %7 = vector.load %arg3[%c0_8, %c0_9, %c0_10] : memref<2x1x8xf32, #tpu.memory_space<vmem>>, vector<2x1x8xf32>
    %cst_11 = arith.constant -1.000000e+09 : f32
    %8 = vector.broadcast %cst_11 : f32 to vector<2x1x8xf32>
    %9 = arith.mulf %7, %8 : vector<2x1x8xf32>
    %c0_12 = arith.constant 0 : index
    %c0_13 = arith.constant 0 : index
    %10 = vector.load %arg16[%c0_12, %c0_13] : memref<3x32xf32, #tpu.memory_space<vmem>>, vector<3x32xf32>
    %c0_14 = arith.constant 0 : index
    %c0_15 = arith.constant 0 : index
    %11 = vector.load %arg17[%c0_14, %c0_15] : memref<3x32xf32, #tpu.memory_space<vmem>>, vector<3x32xf32>
    %c0_16 = arith.constant 0 : index
    %c0_17 = arith.constant 0 : index
    %12 = vector.load %arg4[%c0_16, %c0_17] : memref<32x96xf32, #tpu.memory_space<vmem>>, vector<32x96xf32>
    %c0_18 = arith.constant 0 : index
    %c0_19 = arith.constant 0 : index
    %13 = vector.load %arg5[%c0_18, %c0_19] : memref<1x96xf32, #tpu.memory_space<vmem>>, vector<1x96xf32>
    %c0_20 = arith.constant 0 : index
    %c0_21 = arith.constant 0 : index
    %14 = vector.load %arg6[%c0_20, %c0_21] : memref<32x32xf32, #tpu.memory_space<vmem>>, vector<32x32xf32>
    %c0_22 = arith.constant 0 : index
    %c0_23 = arith.constant 0 : index
    %15 = vector.load %arg7[%c0_22, %c0_23] : memref<1x32xf32, #tpu.memory_space<vmem>>, vector<1x32xf32>
    %cst_24 = arith.constant dense<0.000000e+00> : vector<16x96xf32>
    %16 = tpu.matmul %1, %12, %cst_24 {dimension_numbers = #tpu.dot_dimension_numbers<[1], [0], [0], [1], [0, 0, 1, 1], [], []>} : vector<16x32xf32>, vector<32x96xf32>, vector<16x96xf32> -> vector<16x96xf32>
    %17 = vector.broadcast %13 : vector<1x96xf32> to vector<16x96xf32>
    %18 = arith.addf %16, %17 : vector<16x96xf32>
    %19 = vector.extract_strided_slice %18 {offsets = [0, 0], sizes = [16, 16], strides = [1, 1]} : vector<16x96xf32> to vector<16x16xf32>
    %20 = vector.shape_cast %19 : vector<16x16xf32> to vector<2x8x16xf32>
    %21 = vector.extract_strided_slice %18 {offsets = [0, 32], sizes = [16, 16], strides = [1, 1]} : vector<16x96xf32> to vector<16x16xf32>
    %22 = vector.shape_cast %21 : vector<16x16xf32> to vector<2x8x16xf32>
    %23 = vector.extract_strided_slice %18 {offsets = [0, 64], sizes = [16, 16], strides = [1, 1]} : vector<16x96xf32> to vector<16x16xf32>
    %24 = vector.shape_cast %23 : vector<16x16xf32> to vector<2x8x16xf32>
    "tpu.trace_start"() <{level = 10 : i32, message = "bqd,bkd->bqk"}> : () -> ()
    %cst_25 = arith.constant dense<0.000000e+00> : vector<2x8x8xf32>
    %25 = tpu.matmul %20, %22, %cst_25 {dimension_numbers = #tpu.dot_dimension_numbers<[2], [2], [1], [1], [0, 0, 0, 1, 1, 1], [0], [0]>} : vector<2x8x16xf32>, vector<2x8x16xf32>, vector<2x8x8xf32> -> vector<2x8x8xf32>
    "tpu.trace_stop"() : () -> ()
    %cst_26 = arith.constant 2.500000e-01 : f32
    %26 = vector.broadcast %cst_26 : f32 to vector<2x8x8xf32>
    %27 = arith.mulf %25, %26 : vector<2x8x8xf32>
    %28 = arith.addf %27, %6 : vector<2x8x8xf32>
    %cst_27 = arith.constant dense<0xFF800000> : vector<2x8xf32>
    %29 = vector.multi_reduction <maximumf>, %28, %cst_27 [2] : vector<2x8x8xf32> to vector<2x8xf32>
    %30 = vector.shape_cast %29 : vector<2x8xf32> to vector<2x8x1xf32>
    %31 = vector.broadcast %30 : vector<2x8x1xf32> to vector<2x8x8xf32>
    %32 = arith.subf %28, %31 : vector<2x8x8xf32>
    %33 = math.exp %32 : vector<2x8x8xf32>
    %cst_28 = arith.constant dense<0.000000e+00> : vector<2x8xf32>
    %34 = vector.multi_reduction <add>, %33, %cst_28 [2] : vector<2x8x8xf32> to vector<2x8xf32>
    %35 = vector.shape_cast %34 : vector<2x8xf32> to vector<2x8x1xf32>
    %36 = tpu.reciprocal %35 {approx = true} : vector<2x8x1xf32> -> vector<2x8x1xf32>
    %37 = vector.broadcast %36 : vector<2x8x1xf32> to vector<2x8x8xf32>
    %38 = arith.mulf %33, %37 : vector<2x8x8xf32>
    %c0_29 = arith.constant 0 : index
    %c0_30 = arith.constant 0 : index
    %c0_31 = arith.constant 0 : index
    %c0_32 = arith.constant 0 : index
    %39 = vector.load %arg19[%c0_29, %c0_30, %c0_31, %c0_32] : memref<2x2x8x8xf32, #tpu.memory_space<vmem>>, vector<2x1x8x8xf32>
    %40 = vector.shape_cast %39 : vector<2x1x8x8xf32> to vector<2x8x8xf32>
    %41 = vector.shape_cast %38 : vector<2x8x8xf32> to vector<2x1x8x8xf32>
    tpu.vector_store %arg19[%c0_29, %c0_30, %c0_31, %c0_32], %41 {strides = array<i32>} : memref<2x2x8x8xf32, #tpu.memory_space<vmem>>, vector<2x1x8x8xf32>,
    "tpu.trace_start"() <{level = 10 : i32, message = "bqk,bkd->bqd"}> : () -> ()
    %cst_33 = arith.constant dense<0.000000e+00> : vector<2x8x16xf32>
    %42 = tpu.matmul %38, %24, %cst_33 {dimension_numbers = #tpu.dot_dimension_numbers<[2], [1], [1], [2], [0, 0, 0, 1, 1, 2], [0], [0]>} : vector<2x8x8xf32>, vector<2x8x16xf32>, vector<2x8x16xf32> -> vector<2x8x16xf32>
    "tpu.trace_stop"() : () -> ()
    %43 = vector.extract_strided_slice %18 {offsets = [0, 16], sizes = [16, 16], strides = [1, 1]} : vector<16x96xf32> to vector<16x16xf32>
    %44 = vector.shape_cast %43 : vector<16x16xf32> to vector<2x8x16xf32>
    %45 = vector.extract_strided_slice %18 {offsets = [0, 48], sizes = [16, 16], strides = [1, 1]} : vector<16x96xf32> to vector<16x16xf32>
    %46 = vector.shape_cast %45 : vector<16x16xf32> to vector<2x8x16xf32>
    %47 = vector.extract_strided_slice %18 {offsets = [0, 80], sizes = [16, 16], strides = [1, 1]} : vector<16x96xf32> to vector<16x16xf32>
    %48 = vector.shape_cast %47 : vector<16x16xf32> to vector<2x8x16xf32>
    "tpu.trace_start"() <{level = 10 : i32, message = "bqd,bkd->bqk"}> : () -> ()
    %cst_34 = arith.constant dense<0.000000e+00> : vector<2x8x8xf32>
    %49 = tpu.matmul %44, %46, %cst_34 {dimension_numbers = #tpu.dot_dimension_numbers<[2], [2], [1], [1], [0, 0, 0, 1, 1, 1], [0], [0]>} : vector<2x8x16xf32>, vector<2x8x16xf32>, vector<2x8x8xf32> -> vector<2x8x8xf32>
    "tpu.trace_stop"() : () -> ()
    %cst_35 = arith.constant 2.500000e-01 : f32
    %50 = vector.broadcast %cst_35 : f32 to vector<2x8x8xf32>
    %51 = arith.mulf %49, %50 : vector<2x8x8xf32>
    %52 = arith.addf %51, %6 : vector<2x8x8xf32>
    %cst_36 = arith.constant dense<0xFF800000> : vector<2x8xf32>
    %53 = vector.multi_reduction <maximumf>, %52, %cst_36 [2] : vector<2x8x8xf32> to vector<2x8xf32>
    %54 = vector.shape_cast %53 : vector<2x8xf32> to vector<2x8x1xf32>
    %55 = vector.broadcast %54 : vector<2x8x1xf32> to vector<2x8x8xf32>
    %56 = arith.subf %52, %55 : vector<2x8x8xf32>
    %57 = math.exp %56 : vector<2x8x8xf32>
    %cst_37 = arith.constant dense<0.000000e+00> : vector<2x8xf32>
    %58 = vector.multi_reduction <add>, %57, %cst_37 [2] : vector<2x8x8xf32> to vector<2x8xf32>
    %59 = vector.shape_cast %58 : vector<2x8xf32> to vector<2x8x1xf32>
    %60 = tpu.reciprocal %59 {approx = true} : vector<2x8x1xf32> -> vector<2x8x1xf32>
    %61 = vector.broadcast %60 : vector<2x8x1xf32> to vector<2x8x8xf32>
    %62 = arith.mulf %57, %61 : vector<2x8x8xf32>
    %c0_38 = arith.constant 0 : index
    %c1 = arith.constant 1 : index
    %c0_39 = arith.constant 0 : index
    %c0_40 = arith.constant 0 : index
    %63 = vector.load %arg19[%c0_38, %c1, %c0_39, %c0_40] : memref<2x2x8x8xf32, #tpu.memory_space<vmem>>, vector<2x1x8x8xf32>
    %64 = vector.shape_cast %63 : vector<2x1x8x8xf32> to vector<2x8x8xf32>
    %65 = vector.shape_cast %62 : vector<2x8x8xf32> to vector<2x1x8x8xf32>
    tpu.vector_store %arg19[%c0_38, %c1, %c0_39, %c0_40], %65 {strides = array<i32>} : memref<2x2x8x8xf32, #tpu.memory_space<vmem>>, vector<2x1x8x8xf32>,
    "tpu.trace_start"() <{level = 10 : i32, message = "bqk,bkd->bqd"}> : () -> ()
    %cst_41 = arith.constant dense<0.000000e+00> : vector<2x8x16xf32>
    %66 = tpu.matmul %62, %48, %cst_41 {dimension_numbers = #tpu.dot_dimension_numbers<[2], [1], [1], [2], [0, 0, 0, 1, 1, 2], [0], [0]>} : vector<2x8x8xf32>, vector<2x8x16xf32>, vector<2x8x16xf32> -> vector<2x8x16xf32>
    "tpu.trace_stop"() : () -> ()
    %67 = tpu.concatenate %42, %66 in 2 : vector<2x8x16xf32>, vector<2x8x16xf32> -> vector<2x8x32xf32>
    %68 = vector.shape_cast %67 : vector<2x8x32xf32> to vector<16x32xf32>
    %cst_42 = arith.constant dense<0.000000e+00> : vector<16x32xf32>
    %69 = tpu.matmul %68, %14, %cst_42 {dimension_numbers = #tpu.dot_dimension_numbers<[1], [0], [0], [1], [0, 0, 1, 1], [], []>} : vector<16x32xf32>, vector<32x32xf32>, vector<16x32xf32> -> vector<16x32xf32>
    %70 = vector.broadcast %15 : vector<1x32xf32> to vector<16x32xf32>
    %71 = arith.addf %69, %70 : vector<16x32xf32>
    %72 = arith.addf %71, %1 : vector<16x32xf32>
    %cst_43 = arith.constant dense<0.000000e+00> : vector<16xf32>
    %73 = vector.multi_reduction <add>, %72, %cst_43 [1] : vector<16x32xf32> to vector<16xf32>
    %74 = vector.shape_cast %73 : vector<16xf32> to vector<16x1xf32>
    %cst_44 = arith.constant 3.200000e+01 : f32
    %75 = vector.broadcast %cst_44 : f32 to vector<16x1xf32>
    %76 = arith.divf %74, %75 : vector<16x1xf32>
    %77 = vector.broadcast %76 : vector<16x1xf32> to vector<16x32xf32>
    %78 = arith.subf %72, %77 : vector<16x32xf32>
    %79 = arith.mulf %78, %78 : vector<16x32xf32>
    %cst_45 = arith.constant dense<0.000000e+00> : vector<16xf32>
    %80 = vector.multi_reduction <add>, %79, %cst_45 [1] : vector<16x32xf32> to vector<16xf32>
    %81 = vector.shape_cast %80 : vector<16xf32> to vector<16x1xf32>
    %cst_46 = arith.constant 3.200000e+01 : f32
    %82 = vector.broadcast %cst_46 : f32 to vector<16x1xf32>
    %83 = arith.divf %81, %82 : vector<16x1xf32>
    %84 = vector.broadcast %76 : vector<16x1xf32> to vector<16x32xf32>
    %85 = arith.subf %72, %84 : vector<16x32xf32>
    %cst_47 = arith.constant 9.99999997E-7 : f32
    %86 = vector.broadcast %cst_47 : f32 to vector<16x1xf32>
    %87 = arith.addf %83, %86 : vector<16x1xf32>
    %88 = math.rsqrt %87 : vector<16x1xf32>
    %89 = vector.broadcast %88 : vector<16x1xf32> to vector<16x32xf32>
    %90 = arith.mulf %85, %89 : vector<16x32xf32>
    %91 = vector.extract_strided_slice %10 {offsets = [0, 0], sizes = [1, 32], strides = [1, 1]} : vector<3x32xf32> to vector<1x32xf32>
    %92 = vector.broadcast %91 : vector<1x32xf32> to vector<16x32xf32>
    %93 = arith.mulf %90, %92 : vector<16x32xf32>
    %94 = vector.extract_strided_slice %11 {offsets = [0, 0], sizes = [1, 32], strides = [1, 1]} : vector<3x32xf32> to vector<1x32xf32>
    %95 = vector.broadcast %94 : vector<1x32xf32> to vector<16x32xf32>
    %96 = arith.addf %93, %95 : vector<16x32xf32>
    %c0_48 = arith.constant 0 : index
    %c0_49 = arith.constant 0 : index
    %97 = vector.load %arg8[%c0_48, %c0_49] : memref<32x96xf32, #tpu.memory_space<vmem>>, vector<32x96xf32>
    %c0_50 = arith.constant 0 : index
    %c0_51 = arith.constant 0 : index
    %98 = vector.load %arg9[%c0_50, %c0_51] : memref<1x96xf32, #tpu.memory_space<vmem>>, vector<1x96xf32>
    %c0_52 = arith.constant 0 : index
    %c0_53 = arith.constant 0 : index
    %99 = vector.load %arg10[%c0_52, %c0_53] : memref<32x32xf32, #tpu.memory_space<vmem>>, vector<32x32xf32>
    %c0_54 = arith.constant 0 : index
    %c0_55 = arith.constant 0 : index
    %100 = vector.load %arg11[%c0_54, %c0_55] : memref<1x32xf32, #tpu.memory_space<vmem>>, vector<1x32xf32>
    %cst_56 = arith.constant dense<0.000000e+00> : vector<16x96xf32>
    %101 = tpu.matmul %96, %97, %cst_56 {dimension_numbers = #tpu.dot_dimension_numbers<[1], [0], [0], [1], [0, 0, 1, 1], [], []>} : vector<16x32xf32>, vector<32x96xf32>, vector<16x96xf32> -> vector<16x96xf32>
    %102 = vector.broadcast %98 : vector<1x96xf32> to vector<16x96xf32>
    %103 = arith.addf %101, %102 : vector<16x96xf32>
    %cst_57 = arith.constant dense<0.000000e+00> : vector<16x96xf32>
    %104 = tpu.matmul %3, %97, %cst_57 {dimension_numbers = #tpu.dot_dimension_numbers<[1], [0], [0], [1], [0, 0, 1, 1], [], []>} : vector<16x32xf32>, vector<32x96xf32>, vector<16x96xf32> -> vector<16x96xf32>
    %105 = vector.broadcast %98 : vector<1x96xf32> to vector<16x96xf32>
    %106 = arith.addf %104, %105 : vector<16x96xf32>
    %107 = vector.extract_strided_slice %103 {offsets = [0, 0], sizes = [16, 16], strides = [1, 1]} : vector<16x96xf32> to vector<16x16xf32>
    %108 = vector.shape_cast %107 : vector<16x16xf32> to vector<2x8x16xf32>
    %109 = vector.extract_strided_slice %106 {offsets = [0, 32], sizes = [16, 16], strides = [1, 1]} : vector<16x96xf32> to vector<16x16xf32>
    %110 = vector.shape_cast %109 : vector<16x16xf32> to vector<2x8x16xf32>
    %111 = vector.extract_strided_slice %106 {offsets = [0, 64], sizes = [16, 16], strides = [1, 1]} : vector<16x96xf32> to vector<16x16xf32>
    %112 = vector.shape_cast %111 : vector<16x16xf32> to vector<2x8x16xf32>
    "tpu.trace_start"() <{level = 10 : i32, message = "bqd,bkd->bqk"}> : () -> ()
    %cst_58 = arith.constant dense<0.000000e+00> : vector<2x8x8xf32>
    %113 = tpu.matmul %108, %110, %cst_58 {dimension_numbers = #tpu.dot_dimension_numbers<[2], [2], [1], [1], [0, 0, 0, 1, 1, 1], [0], [0]>} : vector<2x8x16xf32>, vector<2x8x16xf32>, vector<2x8x8xf32> -> vector<2x8x8xf32>
    "tpu.trace_stop"() : () -> ()
    %cst_59 = arith.constant 2.500000e-01 : f32
    %114 = vector.broadcast %cst_59 : f32 to vector<2x8x8xf32>
    %115 = arith.mulf %113, %114 : vector<2x8x8xf32>
    %116 = vector.broadcast %9 : vector<2x1x8xf32> to vector<2x8x8xf32>
    %117 = arith.addf %115, %116 : vector<2x8x8xf32>
    %cst_60 = arith.constant dense<0xFF800000> : vector<2x8xf32>
    %118 = vector.multi_reduction <maximumf>, %117, %cst_60 [2] : vector<2x8x8xf32> to vector<2x8xf32>
    %119 = vector.shape_cast %118 : vector<2x8xf32> to vector<2x8x1xf32>
    %120 = vector.broadcast %119 : vector<2x8x1xf32> to vector<2x8x8xf32>
    %121 = arith.subf %117, %120 : vector<2x8x8xf32>
    %122 = math.exp %121 : vector<2x8x8xf32>
    %cst_61 = arith.constant dense<0.000000e+00> : vector<2x8xf32>
    %123 = vector.multi_reduction <add>, %122, %cst_61 [2] : vector<2x8x8xf32> to vector<2x8xf32>
    %124 = vector.shape_cast %123 : vector<2x8xf32> to vector<2x8x1xf32>
    %125 = tpu.reciprocal %124 {approx = true} : vector<2x8x1xf32> -> vector<2x8x1xf32>
    %126 = vector.broadcast %125 : vector<2x8x1xf32> to vector<2x8x8xf32>
    %127 = arith.mulf %122, %126 : vector<2x8x8xf32>
    %c0_62 = arith.constant 0 : index
    %c0_63 = arith.constant 0 : index
    %c0_64 = arith.constant 0 : index
    %c0_65 = arith.constant 0 : index
    %128 = vector.load %arg20[%c0_62, %c0_63, %c0_64, %c0_65] : memref<2x2x8x8xf32, #tpu.memory_space<vmem>>, vector<2x1x8x8xf32>
    %129 = vector.shape_cast %128 : vector<2x1x8x8xf32> to vector<2x8x8xf32>
    %130 = vector.shape_cast %127 : vector<2x8x8xf32> to vector<2x1x8x8xf32>
    tpu.vector_store %arg20[%c0_62, %c0_63, %c0_64, %c0_65], %130 {strides = array<i32>} : memref<2x2x8x8xf32, #tpu.memory_space<vmem>>, vector<2x1x8x8xf32>,
    "tpu.trace_start"() <{level = 10 : i32, message = "bqk,bkd->bqd"}> : () -> ()
    %cst_66 = arith.constant dense<0.000000e+00> : vector<2x8x16xf32>
    %131 = tpu.matmul %127, %112, %cst_66 {dimension_numbers = #tpu.dot_dimension_numbers<[2], [1], [1], [2], [0, 0, 0, 1, 1, 2], [0], [0]>} : vector<2x8x8xf32>, vector<2x8x16xf32>, vector<2x8x16xf32> -> vector<2x8x16xf32>
    "tpu.trace_stop"() : () -> ()
    %132 = vector.extract_strided_slice %103 {offsets = [0, 16], sizes = [16, 16], strides = [1, 1]} : vector<16x96xf32> to vector<16x16xf32>
    %133 = vector.shape_cast %132 : vector<16x16xf32> to vector<2x8x16xf32>
    %134 = vector.extract_strided_slice %106 {offsets = [0, 48], sizes = [16, 16], strides = [1, 1]} : vector<16x96xf32> to vector<16x16xf32>
    %135 = vector.shape_cast %134 : vector<16x16xf32> to vector<2x8x16xf32>
    %136 = vector.extract_strided_slice %106 {offsets = [0, 80], sizes = [16, 16], strides = [1, 1]} : vector<16x96xf32> to vector<16x16xf32>
    %137 = vector.shape_cast %136 : vector<16x16xf32> to vector<2x8x16xf32>
    "tpu.trace_start"() <{level = 10 : i32, message = "bqd,bkd->bqk"}> : () -> ()
    %cst_67 = arith.constant dense<0.000000e+00> : vector<2x8x8xf32>
    %138 = tpu.matmul %133, %135, %cst_67 {dimension_numbers = #tpu.dot_dimension_numbers<[2], [2], [1], [1], [0, 0, 0, 1, 1, 1], [0], [0]>} : vector<2x8x16xf32>, vector<2x8x16xf32>, vector<2x8x8xf32> -> vector<2x8x8xf32>
    "tpu.trace_stop"() : () -> ()
    %cst_68 = arith.constant 2.500000e-01 : f32
    %139 = vector.broadcast %cst_68 : f32 to vector<2x8x8xf32>
    %140 = arith.mulf %138, %139 : vector<2x8x8xf32>
    %141 = vector.broadcast %9 : vector<2x1x8xf32> to vector<2x8x8xf32>
    %142 = arith.addf %140, %141 : vector<2x8x8xf32>
    %cst_69 = arith.constant dense<0xFF800000> : vector<2x8xf32>
    %143 = vector.multi_reduction <maximumf>, %142, %cst_69 [2] : vector<2x8x8xf32> to vector<2x8xf32>
    %144 = vector.shape_cast %143 : vector<2x8xf32> to vector<2x8x1xf32>
    %145 = vector.broadcast %144 : vector<2x8x1xf32> to vector<2x8x8xf32>
    %146 = arith.subf %142, %145 : vector<2x8x8xf32>
    %147 = math.exp %146 : vector<2x8x8xf32>
    %cst_70 = arith.constant dense<0.000000e+00> : vector<2x8xf32>
    %148 = vector.multi_reduction <add>, %147, %cst_70 [2] : vector<2x8x8xf32> to vector<2x8xf32>
    %149 = vector.shape_cast %148 : vector<2x8xf32> to vector<2x8x1xf32>
    %150 = tpu.reciprocal %149 {approx = true} : vector<2x8x1xf32> -> vector<2x8x1xf32>
    %151 = vector.broadcast %150 : vector<2x8x1xf32> to vector<2x8x8xf32>
    %152 = arith.mulf %147, %151 : vector<2x8x8xf32>
    %c0_71 = arith.constant 0 : index
    %c1_72 = arith.constant 1 : index
    %c0_73 = arith.constant 0 : index
    %c0_74 = arith.constant 0 : index
    %153 = vector.load %arg20[%c0_71, %c1_72, %c0_73, %c0_74] : memref<2x2x8x8xf32, #tpu.memory_space<vmem>>, vector<2x1x8x8xf32>
    %154 = vector.shape_cast %153 : vector<2x1x8x8xf32> to vector<2x8x8xf32>
    %155 = vector.shape_cast %152 : vector<2x8x8xf32> to vector<2x1x8x8xf32>
    tpu.vector_store %arg20[%c0_71, %c1_72, %c0_73, %c0_74], %155 {strides = array<i32>} : memref<2x2x8x8xf32, #tpu.memory_space<vmem>>, vector<2x1x8x8xf32>,
    "tpu.trace_start"() <{level = 10 : i32, message = "bqk,bkd->bqd"}> : () -> ()
    %cst_75 = arith.constant dense<0.000000e+00> : vector<2x8x16xf32>
    %156 = tpu.matmul %152, %137, %cst_75 {dimension_numbers = #tpu.dot_dimension_numbers<[2], [1], [1], [2], [0, 0, 0, 1, 1, 2], [0], [0]>} : vector<2x8x8xf32>, vector<2x8x16xf32>, vector<2x8x16xf32> -> vector<2x8x16xf32>
    "tpu.trace_stop"() : () -> ()
    %157 = tpu.concatenate %131, %156 in 2 : vector<2x8x16xf32>, vector<2x8x16xf32> -> vector<2x8x32xf32>
    %158 = vector.shape_cast %157 : vector<2x8x32xf32> to vector<16x32xf32>
    %cst_76 = arith.constant dense<0.000000e+00> : vector<16x32xf32>
    %159 = tpu.matmul %158, %99, %cst_76 {dimension_numbers = #tpu.dot_dimension_numbers<[1], [0], [0], [1], [0, 0, 1, 1], [], []>} : vector<16x32xf32>, vector<32x32xf32>, vector<16x32xf32> -> vector<16x32xf32>
    %160 = vector.broadcast %100 : vector<1x32xf32> to vector<16x32xf32>
    %161 = arith.addf %159, %160 : vector<16x32xf32>
    %162 = arith.addf %161, %96 : vector<16x32xf32>
    %cst_77 = arith.constant dense<0.000000e+00> : vector<16xf32>
    %163 = vector.multi_reduction <add>, %162, %cst_77 [1] : vector<16x32xf32> to vector<16xf32>
    %164 = vector.shape_cast %163 : vector<16xf32> to vector<16x1xf32>
    %cst_78 = arith.constant 3.200000e+01 : f32
    %165 = vector.broadcast %cst_78 : f32 to vector<16x1xf32>
    %166 = arith.divf %164, %165 : vector<16x1xf32>
    %167 = vector.broadcast %166 : vector<16x1xf32> to vector<16x32xf32>
    %168 = arith.subf %162, %167 : vector<16x32xf32>
    %169 = arith.mulf %168, %168 : vector<16x32xf32>
    %cst_79 = arith.constant dense<0.000000e+00> : vector<16xf32>
    %170 = vector.multi_reduction <add>, %169, %cst_79 [1] : vector<16x32xf32> to vector<16xf32>
    %171 = vector.shape_cast %170 : vector<16xf32> to vector<16x1xf32>
    %cst_80 = arith.constant 3.200000e+01 : f32
    %172 = vector.broadcast %cst_80 : f32 to vector<16x1xf32>
    %173 = arith.divf %171, %172 : vector<16x1xf32>
    %174 = vector.broadcast %166 : vector<16x1xf32> to vector<16x32xf32>
    %175 = arith.subf %162, %174 : vector<16x32xf32>
    %cst_81 = arith.constant 9.99999997E-7 : f32
    %176 = vector.broadcast %cst_81 : f32 to vector<16x1xf32>
    %177 = arith.addf %173, %176 : vector<16x1xf32>
    %178 = math.rsqrt %177 : vector<16x1xf32>
    %179 = vector.broadcast %178 : vector<16x1xf32> to vector<16x32xf32>
    %180 = arith.mulf %175, %179 : vector<16x32xf32>
    %181 = vector.extract_strided_slice %10 {offsets = [1, 0], sizes = [1, 32], strides = [1, 1]} : vector<3x32xf32> to vector<1x32xf32>
    %182 = vector.broadcast %181 : vector<1x32xf32> to vector<16x32xf32>
    %183 = arith.mulf %180, %182 : vector<16x32xf32>
    %184 = vector.extract_strided_slice %11 {offsets = [1, 0], sizes = [1, 32], strides = [1, 1]} : vector<3x32xf32> to vector<1x32xf32>
    %185 = vector.broadcast %184 : vector<1x32xf32> to vector<16x32xf32>
    %186 = arith.addf %183, %185 : vector<16x32xf32>
    %c0_82 = arith.constant 0 : index
    %c0_83 = arith.constant 0 : index
    %187 = vector.load %arg12[%c0_82, %c0_83] : memref<32x64xf32, #tpu.memory_space<vmem>>, vector<32x64xf32>
    %cst_84 = arith.constant dense<0.000000e+00> : vector<16x64xf32>
    %188 = tpu.matmul %186, %187, %cst_84 {dimension_numbers = #tpu.dot_dimension_numbers<[1], [0], [0], [1], [0, 0, 1, 1], [], []>} : vector<16x32xf32>, vector<32x64xf32>, vector<16x64xf32> -> vector<16x64xf32>
    %c0_85 = arith.constant 0 : index
    %c0_86 = arith.constant 0 : index
    %189 = vector.load %arg13[%c0_85, %c0_86] : memref<1x64xf32, #tpu.memory_space<vmem>>, vector<1x64xf32>
    %190 = vector.broadcast %189 : vector<1x64xf32> to vector<16x64xf32>
    %191 = arith.addf %188, %190 : vector<16x64xf32>
    %cst_87 = arith.constant 0.000000e+00 : f32
    %192 = vector.broadcast %cst_87 : f32 to vector<16x64xf32>
    %193 = arith.maximumf %191, %192 : vector<16x64xf32>
    %c0_88 = arith.constant 0 : index
    %c0_89 = arith.constant 0 : index
    %194 = vector.load %arg14[%c0_88, %c0_89] : memref<64x32xf32, #tpu.memory_space<vmem>>, vector<64x32xf32>
    %cst_90 = arith.constant dense<0.000000e+00> : vector<16x32xf32>
    %195 = tpu.matmul %193, %194, %cst_90 {dimension_numbers = #tpu.dot_dimension_numbers<[1], [0], [0], [1], [0, 0, 1, 1], [], []>} : vector<16x64xf32>, vector<64x32xf32>, vector<16x32xf32> -> vector<16x32xf32>
    %c0_91 = arith.constant 0 : index
    %c0_92 = arith.constant 0 : index
    %196 = vector.load %arg15[%c0_91, %c0_92] : memref<1x32xf32, #tpu.memory_space<vmem>>, vector<1x32xf32>
    %197 = vector.broadcast %196 : vector<1x32xf32> to vector<16x32xf32>
    %198 = arith.addf %195, %197 : vector<16x32xf32>
    %199 = arith.addf %198, %186 : vector<16x32xf32>
    %cst_93 = arith.constant dense<0.000000e+00> : vector<16xf32>
    %200 = vector.multi_reduction <add>, %199, %cst_93 [1] : vector<16x32xf32> to vector<16xf32>
    %201 = vector.shape_cast %200 : vector<16xf32> to vector<16x1xf32>
    %cst_94 = arith.constant 3.200000e+01 : f32
    %202 = vector.broadcast %cst_94 : f32 to vector<16x1xf32>
    %203 = arith.divf %201, %202 : vector<16x1xf32>
    %204 = vector.broadcast %203 : vector<16x1xf32> to vector<16x32xf32>
    %205 = arith.subf %199, %204 : vector<16x32xf32>
    %206 = arith.mulf %205, %205 : vector<16x32xf32>
    %cst_95 = arith.constant dense<0.000000e+00> : vector<16xf32>
    %207 = vector.multi_reduction <add>, %206, %cst_95 [1] : vector<16x32xf32> to vector<16xf32>
    %208 = vector.shape_cast %207 : vector<16xf32> to vector<16x1xf32>
    %cst_96 = arith.constant 3.200000e+01 : f32
    %209 = vector.broadcast %cst_96 : f32 to vector<16x1xf32>
    %210 = arith.divf %208, %209 : vector<16x1xf32>
    %211 = vector.broadcast %203 : vector<16x1xf32> to vector<16x32xf32>
    %212 = arith.subf %199, %211 : vector<16x32xf32>
    %cst_97 = arith.constant 9.99999997E-7 : f32
    %213 = vector.broadcast %cst_97 : f32 to vector<16x1xf32>
    %214 = arith.addf %210, %213 : vector<16x1xf32>
    %215 = math.rsqrt %214 : vector<16x1xf32>
    %216 = vector.broadcast %215 : vector<16x1xf32> to vector<16x32xf32>
    %217 = arith.mulf %212, %216 : vector<16x32xf32>
    %218 = vector.extract_strided_slice %10 {offsets = [2, 0], sizes = [1, 32], strides = [1, 1]} : vector<3x32xf32> to vector<1x32xf32>
    %219 = vector.broadcast %218 : vector<1x32xf32> to vector<16x32xf32>
    %220 = arith.mulf %217, %219 : vector<16x32xf32>
    %221 = vector.extract_strided_slice %11 {offsets = [2, 0], sizes = [1, 32], strides = [1, 1]} : vector<3x32xf32> to vector<1x32xf32>
    %222 = vector.broadcast %221 : vector<1x32xf32> to vector<16x32xf32>
    %223 = arith.addf %220, %222 : vector<16x32xf32>
    %224 = vector.shape_cast %223 : vector<16x32xf32> to vector<2x8x32xf32>
    %c0_98 = arith.constant 0 : index
    %c0_99 = arith.constant 0 : index
    %c0_100 = arith.constant 0 : index
    %225 = vector.load %arg18[%c0_98, %c0_99, %c0_100] : memref<2x8x32xf32, #tpu.memory_space<vmem>>, vector<2x8x32xf32>
    tpu.vector_store %arg18[%c0_98, %c0_99, %c0_100], %224 {strides = array<i32>} : memref<2x8x32xf32, #tpu.memory_space<vmem>>, vector<2x8x32xf32>,
    return
  }
}

</mosaic_0001>

<bundles_post_ra>
// kernel: decoder_layer.1
= control target key start
LH: loop header
LB: loop body
LE: loop exit
PB: predicated region body
PF: predicated region fallthrough
CT: control target
= control target key end

     0   :  { %s3521_s0 = inlined_call_operand.hbm [shape: f32[2,8,32], index: 0, kind: input, shape index: {}]   ;;  %s3522_s1 = inlined_call_operand.hbm [shape: f32[2,8,32], index: 1, kind: input, shape index: {}]   ;;  %s3523_s2 = inlined_call_operand.hbm [shape: f32[2,8,8], index: 2, kind: input, shape index: {}]   ;;  %s3524_s3 = inlined_call_operand.vmem [shape: f32[2,1,8], index: 3, kind: input, shape index: {}]   ;;  %s3525_s4 = inlined_call_operand.vmem [shape: f32[32,96], index: 4, kind: input, shape index: {}]   ;;  %s3526_s5 = inlined_call_operand.vmem [shape: f32[1,96], index: 5, kind: input, shape index: {}]   ;;  %s3527_s6 = inlined_call_operand.vmem [shape: f32[32,32], index: 6, kind: input, shape index: {}]   ;;  %s3528_s7 = inlined_call_operand.vmem [shape: f32[1,32], index: 7, kind: input, shape index: {}]   ;;  %s3529_s8 = inlined_call_operand.vmem [shape: f32[32,96], index: 8, kind: input, shape index: {}]   ;;  %s3530_s9 = inlined_call_operand.vmem [shape: f32[1,96], index: 9, kind: input, shape index: {}]   ;;  %s3531_s10 = inlined_call_operand.hbm [shape: f32[32,32], index: 10, kind: input, shape index: {}]   ;;  %s3532_s11 = inlined_call_operand.vmem [shape: f32[1,32], index: 11, kind: input, shape index: {}]   ;;  %s3533_s12 = inlined_call_operand.hbm [shape: f32[32,64], index: 12, kind: input, shape index: {}]   ;;  %s3534_s13 = inlined_call_operand.vmem [shape: f32[1,64], index: 13, kind: input, shape index: {}]   ;;  %s3535_s14 = inlined_call_operand.vmem [shape: f32[64,32], index: 14, kind: input, shape index: {}]   ;;  %s3536_s15 = inlined_call_operand.vmem [shape: f32[1,32], index: 15, kind: input, shape index: {}]   ;;  %s3537_s16 = inlined_call_operand.vmem [shape: f32[3,32], index: 16, kind: input, shape index: {}]   ;;  %s3538_s17 = inlined_call_operand.vmem [shape: f32[3,32], index: 17, kind: input, shape index: {}]   ;;  %s3539_s18 = inlined_call_operand.hbm [shape: f32[2,8,32], index: 18, kind: output, shape index: {0}]   ;;  %s3540_s19 = inlined_call_operand.hbm [shape: f32[2,2,8,8], index: 19, kind: output, shape index: {1}]   ;;  %s3541_s20 = inlined_call_operand.hbm [shape: f32[2,2,8,8], index: 20, kind: output, shape index: {2}]  }
   0x1   :  { %3549 = sst [smem:[#allocation20_spill]] %s3521_s0 }
   0x2   :  { %3550 = sst [smem:[#allocation21_spill]] %s3522_s1 }
   0x3   :  { %3551 = sst [smem:[#allocation22_spill]] %s3523_s2 }
   0x4   :  { %3552 = sst [smem:[#allocation23_spill]] %s3524_s3 }
   0x5   :  { %3553 = sst [smem:[#allocation24_spill]] %s3525_s4 }
   0x6   :  { %3554 = sst [smem:[#allocation25_spill]] %s3539_s18 }
   0x7   :  { %3555 = sst [smem:[#allocation26_spill]] %s3541_s20 }
   0x8   :  { %26 = vsyncpa [#allocation3], 0 }
   0x9   :  { %27 = vsyncpa [#allocation6], 0 }
   0xa   :  { %28 = vsyncpa [#allocation9], 0 }
   0xb   :  { %29 = vsyncpa [#allocation4], 0 }
   0xc   :  { %30 = vsyncpa [#allocation13], 0  ;;  %s2937_s1 = smov [#allocation5]   ;;  %s2938_s23 = smov [#allocation8]  }
   0xd   :  { %s48_s22 = sshll.u32 %s2937_s1, 4  ;;  %s86_s24 = sshll.u32 %s2938_s23, 4  ;;  %s49_s22 = int_to_ptr.vmem [resolvable:$true] %s48_s22  ;;  %s3060_s24 = int_to_ptr.vmem [resolvable:$true] %s86_s24 }
   0xe   :  { %s3556_s3 = sld [smem:[#allocation21_spill]] }
  0x14   :  { %s2751_s26 = scalar_lea.hbm %s3556_s3, 256 }
  0x15   :  { %p2752_p0 = scmp.ne.s32.totalorder %s3556_s3, %s2751_s26  ;;  %p2755_p1 = scmp.lt.u32.totalorder %s2751_s26, %s3556_s3 }
  0x17   :  { %p2757_p2 = pnand %p2755_p1, %p2752_p0 }
  0x19   :  { %2760 = shalt.err (!%p2757_p2)
}
  0x1a   :  { %s2761_s30 = scalar_lea.vmem %s49_s22, 256  ;;  %p2766_p4 = scmp.lt.s32.totalorder %s49_s22, %s49_s22 }
  0x1b   :  { %p2762_p3 = scmp.ne.s32.totalorder %s49_s22, %s2761_s30  ;;  %p2767_p5 = scmp.lt.s32.totalorder %s2761_s30, %s2761_s30 }
  0x1d   :  { %p2768_p6 = por %p2767_p5, %p2766_p4 }
  0x1f   :  { %p2769_p7 = pnand %p2768_p6, %p2762_p3 }
  0x21   :  { %2772 = shalt.err (!%p2769_p7)
}
  0x22   :  { %s2939_s0 = smov 128   ;;  %s2940_s21 = smov 8  }
  0x23   :  { %54 = dma.hbm_to_vmem [thread:$0]  %s3556_s3, 256, %s49_s22, [#allocation6], %s2939_s0, %s2939_s0, %s2940_s21  }
  0x24   :  { %s2773_s26 = scalar_lea.hbm %s3531_s10, 512 }
  0x25   :  { %p2774_p8 = scmp.ne.s32.totalorder %s3531_s10, %s2773_s26  ;;  %p2777_p9 = scmp.lt.u32.totalorder %s2773_s26, %s3531_s10 }
  0x27   :  { %p2779_p10 = pnand %p2777_p9, %p2774_p8 }
  0x29   :  { %2782 = shalt.err (!%p2779_p10)
}
  0x2a   :  { %s2783_s30 = scalar_lea.vmem %s3060_s24, 512  ;;  %p2788_p12 = scmp.lt.s32.totalorder %s3060_s24, %s3060_s24 }
  0x2b   :  { %p2784_p11 = scmp.ne.s32.totalorder %s3060_s24, %s2783_s30  ;;  %p2789_p13 = scmp.lt.s32.totalorder %s2783_s30, %s2783_s30 }
  0x2d   :  { %p2790_p0 = por %p2789_p13, %p2788_p12 }
  0x2f   :  { %p2791_p1 = pnand %p2790_p0, %p2784_p11 }
  0x31   :  { %2794 = shalt.err (!%p2791_p1)
}
  0x32   :  { %92 = dma.hbm_to_vmem [thread:$0]  %s3531_s10, 512, %s3060_s24, [#allocation9], %s2939_s0, %s2939_s0, %s2940_s21  }
  0x33   :  { %s2941_s1 = smov [#allocation2]   ;;  %s2942_s2 = smov [#allocation7]  }
  0x34   :  { %s36_s23 = sshll.u32 %s2941_s1, 4  ;;  %s60_s25 = sshll.u32 %s2942_s2, 4  ;;  %s37_s23 = int_to_ptr.vmem [resolvable:$true] %s36_s23  ;;  %s3097_s25 = int_to_ptr.vmem [resolvable:$true] %s60_s25 }
  0x35   :  { %s3557_s28 = sld [smem:[#allocation20_spill]] }
  0x3b   :  { %s2795_s4 = scalar_lea.hbm %s3557_s28, 256 }
  0x3c   :  { %p2796_p2 = scmp.ne.s32.totalorder %s3557_s28, %s2795_s4  ;;  %p2799_p3 = scmp.lt.u32.totalorder %s2795_s4, %s3557_s28 }
  0x3e   :  { %p2801_p4 = pnand %p2799_p3, %p2796_p2 }
  0x40   :  { %2804 = shalt.err (!%p2801_p4)
}
  0x41   :  { %s2805_s10 = scalar_lea.vmem %s37_s23, 256  ;;  %p2810_p6 = scmp.lt.s32.totalorder %s37_s23, %s37_s23 }
  0x42   :  { %p2806_p5 = scmp.ne.s32.totalorder %s37_s23, %s2805_s10  ;;  %p2811_p7 = scmp.lt.s32.totalorder %s2805_s10, %s2805_s10 }
  0x44   :  { %p2812_p8 = por %p2811_p7, %p2810_p6 }
  0x46   :  { %p2813_p9 = pnand %p2812_p8, %p2806_p5 }
  0x48   :  { %2816 = shalt.err (!%p2813_p9)
}
  0x49   :  { %42 = dma.hbm_to_vmem [thread:$0]  %s3557_s28, 256, %s37_s23, [#allocation3], %s2939_s0, %s2939_s0, %s2940_s21  }
  0x4a   :  { %s3558_s18 = sld [smem:[#allocation22_spill]] }
  0x50   :  { %s2817_s20 = scalar_lea.hbm %s3558_s18, 256 }
  0x51   :  { %p2818_p10 = scmp.ne.s32.totalorder %s3558_s18, %s2817_s20  ;;  %p2821_p11 = scmp.lt.u32.totalorder %s2817_s20, %s3558_s18 }
  0x53   :  { %p2823_p12 = pnand %p2821_p11, %p2818_p10 }
  0x55   :  { %2826 = shalt.err (!%p2823_p12)
}
  0x56   :  { %s2827_s29 = scalar_lea.vmem %s3097_s25, 256  ;;  %p2832_p0 = scmp.lt.s32.totalorder %s3097_s25, %s3097_s25 }
  0x57   :  { %p2828_p13 = scmp.ne.s32.totalorder %s3097_s25, %s2827_s29  ;;  %p2833_p1 = scmp.lt.s32.totalorder %s2827_s29, %s2827_s29 }
  0x59   :  { %p2834_p2 = por %p2833_p1, %p2832_p0 }
  0x5b   :  { %p2835_p3 = pnand %p2834_p2, %p2828_p13 }
  0x5d   :  { %2838 = shalt.err (!%p2835_p3)
}
  0x5e   :  { %66 = dma.hbm_to_vmem [thread:$0]  %s3558_s18, 256, %s3097_s25, [#allocation6], %s2939_s0, %s2939_s0, %s2940_s21  }
  0x5f   :  { %s2943_s30 = smov [#allocation10]   ;;  %s2839_s3 = scalar_lea.hbm %s3533_s12, 512 }
  0x60   :  { %s100_s10 = sshll.u32 %s2943_s30, 4  ;;  %p2840_p4 = scmp.ne.s32.totalorder %s3533_s12, %s2839_s3  ;;  %s101_s10 = int_to_ptr.vmem [resolvable:$true] %s100_s10 }
  0x61   :  { %p2843_p5 = scmp.lt.u32.totalorder %s2839_s3, %s3533_s12 }
  0x63   :  { %p2845_p6 = pnand %p2843_p5, %p2840_p4 }
  0x65   :  { %2848 = shalt.err (!%p2845_p6)
}
  0x66   :  { %s2849_s27 = scalar_lea.vmem %s101_s10, 512  ;;  %p2854_p8 = scmp.lt.s32.totalorder %s101_s10, %s101_s10 }
  0x67   :  { %p2850_p7 = scmp.ne.s32.totalorder %s101_s10, %s2849_s27  ;;  %p2855_p9 = scmp.lt.s32.totalorder %s2849_s27, %s2849_s27 }
  0x69   :  { %p2856_p10 = por %p2855_p9, %p2854_p8 }
  0x6b   :  { %p2857_p11 = pnand %p2856_p10, %p2850_p7 }
  0x6d   :  { %2860 = shalt.err (!%p2857_p11)
}
  0x6e   :  { %106 = dma.hbm_to_vmem [thread:$0]  %s3533_s12, 512, %s101_s10, [#allocation9], %s2939_s0, %s2939_s0, %s2940_s21  }
  0x6f   :  { %2927 = dma.done.wait [#allocation3], 256  }
  0x70   :  { %2928 = vsyncadd [#allocation3], 4294967040 }
  0x71   :  { %2929 = dma.done.wait [#allocation6], 512  }
  0x72   :  { %2930 = vsyncadd [#allocation6], 4294966784 }
  0x73   :  { %2931 = dma.done.wait [#allocation9], 1024  }
  0x74   :  { %2932 = vsyncadd [#allocation9], 4294966272  ;;  %vm162_vm0 = vcmask 261120   ;;  %s3559_s23 = sld [smem:[#allocation24_spill]]  ;;  %v3161_v5 = vld [vmem:[#allocation2] sm:$0xff]  ;;  %v3165_v7 = vld [vmem:[#allocation2 + $0x8] sm:$0xff] }
  0x75   :  { %2468 = vmatprep.mubr.msk.f32.mxu1 %vm162_vm0, %v3161_v5  ;;  %v2944_v8 = vmov 0.0   ;;  %vm2945_vm1 = vmmov 0   ;;  %v2338_v9 = vld [vmem:[%s3526_s5] ss:$0 sm:$0xff]  ;;  %s2946_s20 = smov 96   ;;  %vm247_vm2 = vcmask 130048  }
  0x76   :  { %2481 = vmatprep.subr.mxu0 %v2944_v8  ;;  %2483 = vmatprep.mubr.msk.f32.mxu0 %vm2945_vm1, %v2944_v8  ;;  %v136_v16 = vld [vmem:[#allocation7] sm:$0xff]  ;;  %v137_v19 = vld [vmem:[#allocation7 + $0x8] sm:$0xff]  ;;  %vm403_vm3 = vcmask 64512   ;;  %s2947_s5 = smov 64   ;;  %s2948_s2 = smov 80   ;;  %vm2164_vm4 = vcmask 523264  }
  0x77   :  { %v3198_v17 = vmul.f32 -1e+09, %v136_v16  ;;  %v3201_v23 = vmul.f32 -1e+09, %v137_v19  ;;  %s2949_s26 = smov 112   ;;  %s2950_s27 = smov 48  }
  0x78   :  { %s2951_s22 = smov 16   ;;  %s3560_s24 = sld [smem:[#allocation23_spill]] }
  0x7a   :  { %v146_v0 = vld [vmem:[%s3559_s23] sm:$0xff]  ;;  %v147_v1 = vld [vmem:[%s3559_s23 + $0x8] sm:$0xff]  ;;  %v148_v2 = vld [vmem:[%s3559_s23 + $0x10] sm:$0xff] }
  0x7b   :  { %v2625_v3 = vpack.c.bf16 %v147_v1, %v146_v0  ;;  %v149_v4 = vld [vmem:[%s3559_s23 + $0x18] sm:$0xff] }
  0x7c   :  { %v2629_v6 = vpack.c.bf16 %v149_v4, %v148_v2 }
  0x7d   :  { %2626 = vmatprep.subr.bf16.mxu1 %v2625_v3 }
  0x7e   :  { %2628 = vmatpush3.bf16.msra.mxu1 %v2625_v3 }
  0x7f   :  { %2630 = vmatprep.subr.bf16.mxu1 %v2629_v6 }
  0x82   :  { %2632 = vmatpush3.bf16.msra.mxu1 %v2629_v6 }
  0x83   :  { %2471 = vmatprep.subr.mxu1 %v2944_v8 }
  0x85   :  { %2469 = vmatmul.mubr.msk.f32.vlgmr.msra.gmra.mrb[0].mxu1 %vm162_vm0, %v3165_v7 }
  0x86   :  { %2473 = vmatprep.mubr.msk.f32.mxu1 %vm2945_vm1, %v2944_v8 }
 0x158   :  { %v2470_v10 = vpop.f32.mrb[0].mxu1 }
 0x159   :  { %v235_v11 = vpop.f32.mrb[1].mxu1  ;;  %v3182_v13 = vadd.f32 %v2470_v10, %v2338_v9 }
 0x15a   :  { %v3178_v12 = vadd.f32 %v2338_v9, %v235_v11 }
 0x15c   :  { %245 = vrot.lane.b32.xlu0 %v3178_v12, %s2946_s20 }
 0x160   :  { %323 = vrot.lane.b32.xlu0 %v3182_v13, %s2946_s20 }
 0x1ce   :  { %v246_v14 = vpop.permute.xlu0 %245 }
 0x1cf   :  { %2472 = vmatpush3.xpose.msk.msra.mxu1 %vm247_vm2, %v246_v14 }
 0x1d0   :  { %2476 = vmatprep.subr.mxu1 %v2944_v8 }
 0x1d2   :  { %2474 = vmatmul.mubr.msk.f32.vlgmr.msra.gmra.mrb[2].mxu1 %vm247_vm2, %v3178_v12  ;;  %v324_v15 = vpop.permute.xlu0 %323 }
 0x1d3   :  { %2477 = vmatpush3.xpose.msk.msra.mxu1 %vm247_vm2, %v324_v15  ;;  %2478 = vmatprep.mubr.msk.f32.mxu1 %vm2945_vm1, %v2944_v8 }
 0x1d4   :  { %2486 = vmatprep.subr.mxu1 %v2944_v8 }
 0x1d6   :  { %2479 = vmatmul.mubr.msk.f32.vlgmr.msra.gmra.mrb[4].mxu1 %vm247_vm2, %v3182_v13 }
 0x1d7   :  { %2488 = vmatprep.mubr.msk.f32.mxu1 %vm2945_vm1, %v2944_v8 }
 0x2a5   :  { %v318_v18 = vpop.f32.mrb[2].mxu1 }
 0x2a6   :  { %v399_v20 = vmul.f32 0.25, %v318_v18  ;;  %v2475_v21 = vpop.f32.mrb[3].mxu1 }
 0x2a8   :  { %v401_v22 = vadd.f32 %v399_v20, %v3198_v17 }
 0x2a9   :  { %v395_v24 = vpop.f32.mrb[4].mxu1 }
 0x2aa   :  { %v400_v25 = vmul.f32 0.25, %v395_v24  ;;  %v2480_v26 = vpop.f32.mrb[5].mxu1  ;;  %v404_v27 = vsel %vm403_vm3, %v401_v22, -inf  ;;  %v152_v24 = vld [vmem:[%s3527_s6 + $0x8] sm:$0xff] }
 0x2ab   :  { %405 = vmax.xlane.f32.xlu1 %v404_v27  ;;  %v153_v26 = vld [vmem:[%s3527_s6 + $0x10] sm:$0xff]  ;;  %v154_v27 = vld [vmem:[%s3527_s6 + $0x18] sm:$0xff] }
 0x2ac   :  { %v402_v28 = vadd.f32 %v400_v25, %v3201_v23 }
 0x2ae   :  { %v407_v29 = vsel %vm403_vm3, %v402_v28, -inf }
 0x2af   :  { %408 = vmax.xlane.f32.xlu1 %v407_v29 }
 0x2c0   :  { %428 = vrot.lane.b32.xlu1 %v3178_v12, %s2947_s5 }
 0x2c4   :  { %504 = vrot.lane.b32.xlu1 %v3182_v13, %s2947_s5 }
 0x2c8   :  { %582 = vrot.lane.b32.xlu1 %v3178_v12, %s2948_s2 }
 0x2cc   :  { %660 = vrot.lane.b32.xlu1 %v3182_v13, %s2948_s2 }
 0x338   :  { %v406_v30 = vpop.xlane.xlu1 %405 }
 0x339   :  { %v410_v31 = vsub.f32 %v401_v22, %v406_v30 }
 0x33b   :  { %v412_v32 = vmul.f32 1.442695, %v410_v31 }
 0x33c   :  { %v409_v33 = vpop.xlane.xlu1 %408 }
 0x33d   :  { %2707 = vpow2.f32 %v412_v32  ;;  %v411_v34 = vsub.f32 %v402_v28, %v409_v33  ;;  %v2637_v28 = vpack.c.bf16 %v154_v27, %v153_v26 }
 0x33f   :  { %v414_v35 = vmul.f32 1.442695, %v411_v34 }
 0x340   :  { %v429_v36 = vpop.permute.xlu1 %428 }
 0x341   :  { %2709 = vpow2.f32 %v414_v35  ;;  %2482 = vmatpush3.msra.mxu0 %v429_v36 }
 0x342   :  { %2491 = vmatprep.subr.mxu0 %v2944_v8 }
 0x344   :  { %v505_v37 = vpop.permute.xlu1 %504 }
 0x345   :  { %2487 = vmatpush3.msra.mxu1 %v505_v37  ;;  %v2353_v37 = vld [vmem:[%s3528_s7] ss:$0 sm:$0xff] }
 0x346   :  { %2496 = vmatprep.subr.mxu1 %v2944_v8 }
 0x347   :  { %v2708_v38 = vpop.eup %2707 }
 0x348   :  { %v416_v39 = vsel %vm403_vm3, %v2708_v38, 0.0  ;;  %v583_v42 = vpop.permute.xlu1 %582 }
 0x349   :  { %417 = vadd.xlane.f32.xlu0 %v416_v39 }
 0x34b   :  { %v2710_v40 = vpop.eup %2709 }
 0x34c   :  { %v419_v41 = vsel %vm403_vm3, %v2710_v40, 0.0  ;;  %v661_v43 = vpop.permute.xlu1 %660 }
 0x34d   :  { %420 = vadd.xlane.f32.xlu1 %v419_v41 }
 0x35e   :  { %658 = vrot.lane.b32.xlu1 %v3182_v13, %s2949_s26 }
 0x35f   :  { %580 = vrot.lane.b32.xlu0 %v3178_v12, %s2949_s26 }
 0x3d6   :  { %v418_v44 = vpop.xlane.xlu0 %417 }
 0x3d7   :  { %2711 = vrcp.f32 %v418_v44 }
 0x3da   :  { %v421_v45 = vpop.xlane.xlu1 %420  ;;  %v581_v50 = vpop.permute.xlu0 %580 }
 0x3db   :  { %2713 = vrcp.f32 %v421_v45 }
 0x3de   :  { %v659_v51 = vpop.permute.xlu1 %658 }
 0x3e1   :  { %v2712_v46 = vpop.eup %2711 }
 0x3e2   :  { %v424_v47 = vmul.f32 %v2712_v46, %v2708_v38  ;;  %v1055_v46 = vld [vmem:[%s3529_s8] sm:$0xff] }
 0x3e4   :  { %2484 = vmatmul.mubr.msk.f32.vlgmr.msra.gmra.mrb[0].mxu0 %vm403_vm3, %v424_v47  ;;  %426 = vst.msk [vmem:[#allocation12] sm:$0xff] %vm403_vm3, %v424_v47  ;;  %v1056_v47 = vld [vmem:[%s3529_s8 + $0x8] sm:$0xff] }
 0x3e5   :  { %v2714_v48 = vpop.eup %2713  ;;  %2492 = vmatpush3.xpose.msk.msra.mxu0 %vm247_vm2, %v583_v42  ;;  %2493 = vmatprep.mubr.msk.f32.mxu0 %vm2945_vm1, %v2944_v8 }
 0x3e6   :  { %v425_v49 = vmul.f32 %v2714_v48, %v2710_v40  ;;  %2501 = vmatprep.subr.mxu0 %v2944_v8  ;;  %v2641_v48 = vpack.c.bf16 %v1056_v47, %v1055_v46 }
 0x3e8   :  { %427 = vst.msk [vmem:[#allocation12 + $0x10] sm:$0xff] %vm403_vm3, %v425_v49  ;;  %2489 = vmatmul.mubr.msk.f32.vlgmr.msra.gmra.mrb[6].mxu1 %vm403_vm3, %v425_v49  ;;  %2494 = vmatmul.mubr.msk.f32.vlgmr.msra.gmra.mrb[2].mxu0 %vm247_vm2, %v581_v50  ;;  %v134_v49 = vld [vmem:[#allocation5] sm:$0xff] }
 0x3e9   :  { %2497 = vmatpush3.xpose.msk.msra.mxu1 %vm247_vm2, %v661_v43  ;;  %2498 = vmatprep.mubr.msk.f32.mxu1 %vm2945_vm1, %v2944_v8 }
 0x3ea   :  { %2506 = vmatprep.subr.mxu1 %v2944_v8  ;;  %2503 = vmatprep.mubr.msk.f32.mxu0 %vm2945_vm1, %v2944_v8 }
 0x3ec   :  { %2499 = vmatmul.mubr.msk.f32.vlgmr.msra.gmra.mrb[8].mxu1 %vm247_vm2, %v659_v51  ;;  %v135_v51 = vld [vmem:[#allocation5 + $0x8] sm:$0xff] }
 0x3ed   :  { %2508 = vmatprep.mubr.msk.f32.mxu1 %vm2945_vm1, %v2944_v8 }
 0x4b7   :  { %v3240_v52 = vpop.f32.mrb[0].mxu0 }
 0x4b8   :  { %v2485_v53 = vpop.f32.mrb[1].mxu0 }
 0x4bb   :  { %v3242_v54 = vpop.f32.mrb[6].mxu1  ;;  %v654_v55 = vpop.f32.mrb[2].mxu0 }
 0x4bc   :  { %v736_v56 = vmul.f32 0.25, %v654_v55  ;;  %v2490_v57 = vpop.f32.mrb[7].mxu1  ;;  %v2495_v58 = vpop.f32.mrb[3].mxu0 }
 0x4be   :  { %v738_v59 = vadd.f32 %v736_v56, %v3198_v17 }
 0x4bf   :  { %v732_v60 = vpop.f32.mrb[8].mxu1 }
 0x4c0   :  { %v737_v61 = vmul.f32 0.25, %v732_v60  ;;  %v2500_v62 = vpop.f32.mrb[9].mxu1  ;;  %v740_v63 = vsel %vm403_vm3, %v738_v59, -inf }
 0x4c1   :  { %741 = vmax.xlane.f32.xlu1 %v740_v63  ;;  %v2356_v62 = vld [vmem:[%s3530_s9] ss:$0 sm:$0xff] }
 0x4c2   :  { %v739_v0 = vadd.f32 %v737_v61, %v3201_v23 }
 0x4c4   :  { %v743_v1 = vsel %vm403_vm3, %v739_v0, -inf }
 0x4c5   :  { %744 = vmax.xlane.f32.xlu0 %v743_v1 }
 0x4db   :  { %841 = vrot.lane.b32.xlu0 %v3182_v13, %s2950_s27 }
 0x54e   :  { %v742_v2 = vpop.xlane.xlu1 %741 }
 0x54f   :  { %v746_v3 = vsub.f32 %v738_v59, %v742_v2 }
 0x551   :  { %v748_v4 = vmul.f32 1.442695, %v746_v3 }
 0x552   :  { %v745_v6 = vpop.xlane.xlu0 %744 }
 0x553   :  { %2715 = vpow2.f32 %v748_v4  ;;  %v747_v9 = vsub.f32 %v739_v0, %v745_v6  ;;  %v1043_v6 = vlaneseq }
 0x555   :  { %v750_v10 = vmul.f32 1.442695, %v747_v9 }
 0x556   :  { %v842_v11 = vpop.permute.xlu0 %841 }
 0x557   :  { %2717 = vpow2.f32 %v750_v10  ;;  %2507 = vmatpush3.msra.mxu1 %v842_v11 }
 0x558   :  { %2642 = vmatprep.subr.bf16.mxu1 %v2641_v48 }
 0x55d   :  { %v2716_v14 = vpop.eup %2715 }
 0x55e   :  { %v752_v15 = vsel %vm403_vm3, %v2716_v14, 0.0 }
 0x55f   :  { %753 = vadd.xlane.f32.xlu1 %v752_v15 }
 0x561   :  { %v2718_v16 = vpop.eup %2717 }
 0x562   :  { %v755_v17 = vsel %vm403_vm3, %v2718_v16, 0.0 }
 0x563   :  { %756 = vadd.xlane.f32.xlu1 %v755_v17  ;;  %v3322_v17 = vld [vmem:[%s3537_s16] sm:$0x7] }
 0x574   :  { %765 = vrot.lane.b32.xlu1 %v3178_v12, %s2950_s27  ;;  %v151_v12 = vld [vmem:[%s3527_s6] sm:$0xff] }
 0x575   :  { %v2633_v25 = vpack.c.bf16 %v152_v24, %v151_v12 }
 0x5ec   :  { %v754_v13 = vpop.xlane.xlu1 %753 }
 0x5ed   :  { %2719 = vrcp.f32 %v754_v13  ;;  %v3327_v13 = vld [vmem:[%s3538_s17] sm:$0x7] }
 0x5f0   :  { %v757_v18 = vpop.xlane.xlu1 %756 }
 0x5f1   :  { %2721 = vrcp.f32 %v757_v18 }
 0x5f4   :  { %v766_v19 = vpop.permute.xlu1 %765 }
 0x5f5   :  { %2502 = vmatpush3.msra.mxu0 %v766_v19 }
 0x5f6   :  { %2634 = vmatprep.subr.bf16.mxu0 %v2633_v25 }
 0x5f7   :  { %v2720_v20 = vpop.eup %2719 }
 0x5f8   :  { %v760_v21 = vmul.f32 %v2720_v20, %v2716_v14  ;;  %v3316_v14 = vshrl.u32 %v1043_v6, 7 }
 0x5fa   :  { %763 = vst.msk [vmem:[#allocation12 + $0x8] sm:$0xff] %vm403_vm3, %v760_v21  ;;  %2504 = vmatmul.mubr.msk.f32.vlgmr.msra.gmra.mrb[4].mxu0 %vm403_vm3, %v760_v21 }
 0x5fb   :  { %v2722_v22 = vpop.eup %2721  ;;  %2636 = vmatpush3.bf16.msra.mxu0 %v2633_v25 }
 0x5fc   :  { %v761_v23 = vmul.f32 %v2722_v22, %v2718_v16  ;;  %2638 = vmatprep.subr.bf16.mxu0 %v2637_v28  ;;  %v1045_v16 = vsub.s32 0, %v3316_v14 }
 0x5fe   :  { %764 = vst.msk [vmem:[#allocation12 + $0x18] sm:$0xff] %vm403_vm3, %v761_v23  ;;  %2509 = vmatmul.mubr.msk.f32.vlgmr.msra.gmra.mrb[10].mxu1 %vm403_vm3, %v761_v23  ;;  %v1046_v18 = vrot.slane %v3322_v17, %v1045_v16  ;;  %v1052_v21 = vrot.slane %v3327_v13, %v1045_v16 }
 0x5ff   :  { %2640 = vmatpush3.bf16.msra.mxu0 %v2637_v28  ;;  %2644 = vmatpush3.bf16.msra.mxu1 %v2641_v48 }
 0x600   :  { %2650 = vmatprep.subr.bf16.mxu0 %v2641_v48 }
 0x6cd   :  { %v837_v29 = vpop.f32.mrb[4].mxu0 }
 0x6ce   :  { %919 = vrot.lane.b32.xlu1 %v837_v29, %s2951_s22  ;;  %v2505_v30 = vpop.f32.mrb[5].mxu0 }
 0x6d1   :  { %v913_v31 = vpop.f32.mrb[10].mxu1 }
 0x6d2   :  { %921 = vrot.lane.b32.xlu1 %v913_v31, %s2951_s22  ;;  %v2510_v32 = vpop.f32.mrb[11].mxu1 }
 0x740   :  { %v920_v33 = vpop.permute.xlu1 %919 }
 0x741   :  { %v925_v34 = vsel %vm247_vm2, %v3240_v52, %v920_v33  ;;  %v140_v33 = vld [vmem:[%s3560_s24] sm:$0x1] }
 0x742   :  { %2519 = vmatprep.mubr.msk.f32.mxu0 %vm162_vm0, %v925_v34  ;;  %v142_v34 = vmul.f32 -1e+09, %v140_v33 }
 0x744   :  { %v922_v35 = vpop.permute.xlu1 %921 }
 0x745   :  { %v926_v36 = vsel %vm247_vm2, %v3242_v54, %v922_v35  ;;  %v141_v35 = vld [vmem:[%s3560_s24 + $0x1] sm:$0x1] }
 0x746   :  { %2520 = vmatmul.mubr.msk.f32.vlgmr.msra.gmra.mrb[6].mxu0 %vm162_vm0, %v926_v36  ;;  %v3357_v36 = vrot.slane %v142_v34, %v1045_v16 }
 0x747   :  { %2541 = vmatprep.mubr.msk.f32.mxu0 %vm162_vm0, %v134_v49  ;;  %2652 = vmatpush3.bf16.msra.mxu0 %v2641_v48 }
 0x819   :  { %v2521_v38 = vpop.f32.mrb[6].mxu0 }
 0x81a   :  { %v1011_v39 = vadd.f32 %v2521_v38, %v2353_v37  ;;  %v1005_v40 = vpop.f32.mrb[7].mxu0 }
 0x81b   :  { %v1006_v41 = vadd.f32 %v2353_v37, %v1005_v40  ;;  %v143_v37 = vmul.f32 -1e+09, %v141_v35 }
 0x81c   :  { %v1015_v42 = vadd.f32 %v1011_v39, %v3165_v7  ;;  %v1057_v7 = vld [vmem:[%s3529_s8 + $0x10] sm:$0xff] }
 0x81d   :  { %v1014_v43 = vadd.f32 %v1006_v41, %v3161_v5  ;;  %v1058_v5 = vld [vmem:[%s3529_s8 + $0x18] sm:$0xff] }
 0x81e   :  { %v1019_v44 = vsel %vm162_vm0, %v1015_v42, 0.0  ;;  %v2645_v50 = vpack.c.bf16 %v1058_v5, %v1057_v7 }
 0x81f   :  { %1020 = vadd.xlane.f32.xlu1 %v1019_v44  ;;  %v1016_v45 = vsel %vm162_vm0, %v1014_v43, 0.0 }
 0x820   :  { %1017 = vadd.xlane.f32.xlu0 %v1016_v45  ;;  %2654 = vmatprep.subr.bf16.mxu0 %v2645_v50 }
 0x821   :  { %2646 = vmatprep.subr.bf16.mxu1 %v2645_v50  ;;  %2656 = vmatpush3.bf16.msra.mxu0 %v2645_v50 }
 0x822   :  { %2648 = vmatpush3.bf16.msra.mxu1 %v2645_v50  ;;  %2554 = vmatprep.subr.mxu0 %v2944_v8 }
 0x823   :  { %2544 = vmatprep.subr.mxu1 %v2944_v8 }
 0x824   :  { %2542 = vmatmul.mubr.msk.f32.vlgmr.msra.gmra.mrb[8].mxu0 %vm162_vm0, %v135_v51 }
 0x825   :  { %2556 = vmatprep.mubr.msk.f32.mxu0 %vm2945_vm1, %v2944_v8 }
 0x8ac   :  { %v1021_v52 = vpop.xlane.xlu1 %1020 }
 0x8ad   :  { %v1024_v53 = vmul.f32 0.03125, %v1021_v52  ;;  %v1018_v54 = vpop.xlane.xlu0 %1017 }
 0x8ae   :  { %v1023_v55 = vmul.f32 0.03125, %v1018_v54 }
 0x8af   :  { %v1026_v56 = vsub.f32 %v1015_v42, %v1024_v53  ;;  %v3360_v42 = vrot.slane %v143_v37, %v1045_v16 }
 0x8b0   :  { %v1025_v57 = vsub.f32 %v1014_v43, %v1023_v55 }
 0x8b1   :  { %v1028_v60 = vmul.f32 %v1026_v56, %v1026_v56 }
 0x8b2   :  { %v1027_v58 = vmul.f32 %v1025_v57, %v1025_v57 }
 0x8b3   :  { %v1032_v61 = vsel %vm162_vm0, %v1028_v60, 0.0 }
 0x8b4   :  { %v1029_v59 = vsel %vm162_vm0, %v1027_v58, 0.0 }
 0x8b5   :  { %1030 = vadd.xlane.f32.xlu0 %v1029_v59 }
 0x8b9   :  { %1033 = vadd.xlane.f32.xlu0 %v1032_v61 }
 0x8f7   :  { %v2543_v63 = vpop.f32.mrb[8].mxu0 }
 0x8f8   :  { %v3308_v0 = vadd.f32 %v2543_v63, %v2356_v62  ;;  %v1224_v1 = vpop.f32.mrb[9].mxu0 }
 0x8f9   :  { %v3310_v2 = vadd.f32 %v2356_v62, %v1224_v1 }
 0x8fa   :  { %1312 = vrot.lane.b32.xlu0 %v3308_v0, %s2946_s20 }
 0x8fb   :  { %1234 = vrot.lane.b32.xlu1 %v3310_v2, %s2946_s20 }
 0x942   :  { %v1031_v3 = vpop.xlane.xlu0 %1030 }
 0x943   :  { %v1035_v4 = vmul.f32 0.03125, %v1031_v3 }
 0x945   :  { %v1037_v9 = vadd.f32 1e-06, %v1035_v4 }
 0x946   :  { %v1034_v10 = vpop.xlane.xlu0 %1033 }
 0x947   :  { %2723 = vrsqrt.f32 %v1037_v9  ;;  %v1036_v11 = vmul.f32 0.03125, %v1034_v10 }
 0x949   :  { %v1038_v15 = vadd.f32 1e-06, %v1036_v11 }
 0x94b   :  { %2725 = vrsqrt.f32 %v1038_v15 }
 0x951   :  { %v2724_v19 = vpop.eup %2723 }
 0x952   :  { %v1041_v20 = vmul.f32 %v2724_v19, %v1025_v57 }
 0x954   :  { %v1047_v22 = vmul.f32 %v1046_v18, %v1041_v20 }
 0x955   :  { %v2726_v23 = vpop.eup %2725 }
 0x956   :  { %v1042_v12 = vmul.f32 %v2726_v23, %v1026_v56  ;;  %v3331_v24 = vadd.f32 %v1052_v21, %v1047_v22 }
 0x958   :  { %v1048_v25 = vmul.f32 %v1046_v18, %v1042_v12  ;;  %2530 = vmatprep.mubr.msk.f32.mxu1 %vm162_vm0, %v3331_v24 }
 0x95a   :  { %v3335_v26 = vadd.f32 %v1052_v21, %v1048_v25 }
 0x95c   :  { %2531 = vmatmul.mubr.msk.f32.vlgmr.msra.gmra.mrb[12].mxu1 %vm162_vm0, %v3335_v26 }
 0x95d   :  { %2546 = vmatprep.mubr.msk.f32.mxu1 %vm2945_vm1, %v2944_v8 }
 0x96c   :  { %v1313_v31 = vpop.permute.xlu0 %1312 }
 0x96d   :  { %v1235_v27 = vpop.permute.xlu1 %1234 }
 0x96e   :  { %2545 = vmatpush3.xpose.msk.msra.mxu1 %vm247_vm2, %v1235_v27 }
 0x96f   :  { %2549 = vmatprep.subr.mxu1 %v2944_v8 }
 0xa2f   :  { %v2532_v28 = vpop.f32.mrb[12].mxu1 }
 0xa30   :  { %v1143_v29 = vpop.f32.mrb[13].mxu1  ;;  %v1149_v32 = vadd.f32 %v2532_v28, %v2356_v62 }
 0xa31   :  { %v1144_v30 = vadd.f32 %v2356_v62, %v1143_v29 }
 0xa33   :  { %2547 = vmatmul.mubr.msk.f32.vlgmr.msra.gmra.mrb[14].mxu1 %vm247_vm2, %v1144_v30 }
 0xa34   :  { %2550 = vmatpush3.xpose.msk.msra.mxu1 %vm247_vm2, %v1313_v31  ;;  %2551 = vmatprep.mubr.msk.f32.mxu1 %vm2945_vm1, %v2944_v8 }
 0xa35   :  { %2559 = vmatprep.subr.mxu1 %v2944_v8 }
 0xa37   :  { %2552 = vmatmul.mubr.msk.f32.vlgmr.msra.gmra.mrb[16].mxu1 %vm247_vm2, %v1149_v32 }
 0xa38   :  { %2561 = vmatprep.mubr.msk.f32.mxu1 %vm2945_vm1, %v2944_v8 }
 0xb06   :  { %v1307_v38 = vpop.f32.mrb[14].mxu1 }
 0xb07   :  { %v1389_v39 = vmul.f32 0.25, %v1307_v38  ;;  %v2548_v40 = vpop.f32.mrb[15].mxu1 }
 0xb09   :  { %v1403_v41 = vadd.f32 %v3357_v36, %v1389_v39 }
 0xb0a   :  { %v1385_v43 = vpop.f32.mrb[16].mxu1 }
 0xb0b   :  { %v1390_v44 = vmul.f32 0.25, %v1385_v43  ;;  %v2553_v45 = vpop.f32.mrb[17].mxu1  ;;  %v1405_v46 = vsel %vm403_vm3, %v1403_v41, -inf }
 0xb0c   :  { %1406 = vmax.xlane.f32.xlu1 %v1405_v46  ;;  %v1060_v45 = vld [vmem:[#allocation8] sm:$0xff] }
 0xb0d   :  { %v1404_v47 = vadd.f32 %v3360_v42, %v1390_v44 }
 0xb0f   :  { %v1408_v7 = vsel %vm403_vm3, %v1404_v47, -inf }
 0xb10   :  { %1409 = vmax.xlane.f32.xlu0 %v1408_v7  ;;  %v1063_v7 = vld [vmem:[#allocation8 + $0x18] sm:$0xff] }
 0xb1d   :  { %1429 = vrot.lane.b32.xlu1 %v3310_v2, %s2947_s5 }
 0xb21   :  { %1583 = vrot.lane.b32.xlu1 %v3310_v2, %s2948_s2 }
 0xb25   :  { %1661 = vrot.lane.b32.xlu1 %v3308_v0, %s2948_s2 }
 0xb26   :  { %1505 = vrot.lane.b32.xlu0 %v3308_v0, %s2947_s5 }
 0xb99   :  { %v1407_v48 = vpop.xlane.xlu1 %1406 }
 0xb9a   :  { %v1411_v5 = vsub.f32 %v1403_v41, %v1407_v48 }
 0xb9c   :  { %v1413_v49 = vmul.f32 1.442695, %v1411_v5 }
 0xb9d   :  { %v1430_v50 = vpop.permute.xlu1 %1429  ;;  %v1410_v51 = vpop.xlane.xlu0 %1409 }
 0xb9e   :  { %2727 = vpow2.f32 %v1413_v49  ;;  %v1412_v52 = vsub.f32 %v1404_v47, %v1410_v51  ;;  %2555 = vmatpush3.msra.mxu0 %v1430_v50  ;;  %v1062_v47 = vld [vmem:[#allocation8 + $0x10] sm:$0xff] }
 0xb9f   :  { %2564 = vmatprep.subr.mxu0 %v2944_v8  ;;  %v2661_v48 = vpack.c.bf16 %v1063_v7, %v1062_v47  ;;  %v2155_v7 = vld [vmem:[%s3535_s14 + $0x30] sm:$0xff] }
 0xba0   :  { %v1415_v53 = vmul.f32 1.442695, %v1412_v52 }
 0xba1   :  { %v1506_v54 = vpop.permute.xlu0 %1505  ;;  %v1584_v59 = vpop.permute.xlu1 %1583 }
 0xba2   :  { %2729 = vpow2.f32 %v1415_v53  ;;  %2560 = vmatpush3.msra.mxu1 %v1506_v54 }
 0xba3   :  { %2569 = vmatprep.subr.mxu1 %v2944_v8 }
 0xba5   :  { %v1662_v60 = vpop.permute.xlu1 %1661 }
 0xba8   :  { %v2728_v55 = vpop.eup %2727 }
 0xba9   :  { %v1417_v56 = vsel %vm403_vm3, %v2728_v55, 0.0 }
 0xbaa   :  { %1418 = vadd.xlane.f32.xlu1 %v1417_v56  ;;  %v2373_v56 = vld [vmem:[%s3532_s11] ss:$0 sm:$0xff] }
 0xbac   :  { %v2730_v57 = vpop.eup %2729 }
 0xbad   :  { %v1420_v58 = vsel %vm403_vm3, %v2730_v57, 0.0 }
 0xbae   :  { %1421 = vadd.xlane.f32.xlu0 %v1420_v58 }
 0xbbb   :  { %1659 = vrot.lane.b32.xlu1 %v1149_v32, %s2949_s26 }
 0xbc4   :  { %1581 = vrot.lane.b32.xlu0 %v1144_v30, %s2949_s26 }
 0xc37   :  { %v1419_v61 = vpop.xlane.xlu1 %1418 }
 0xc38   :  { %2731 = vrcp.f32 %v1419_v61 }
 0xc3b   :  { %v1422_v62 = vpop.xlane.xlu0 %1421  ;;  %v1660_v9 = vpop.permute.xlu1 %1659 }
 0xc3c   :  { %2733 = vrcp.f32 %v1422_v62 }
 0xc3f   :  { %v1582_v6 = vpop.permute.xlu0 %1581 }
 0xc42   :  { %v2732_v63 = vpop.eup %2731 }
 0xc43   :  { %v1425_v1 = vmul.f32 %v2732_v63, %v2728_v55 }
 0xc45   :  { %1427 = vst.msk [vmem:[#allocation14] sm:$0xff] %vm403_vm3, %v1425_v1  ;;  %2557 = vmatmul.mubr.msk.f32.vlgmr.msra.gmra.mrb[10].mxu0 %vm403_vm3, %v1425_v1 }
 0xc46   :  { %v2734_v3 = vpop.eup %2733  ;;  %2565 = vmatpush3.xpose.msk.msra.mxu0 %vm247_vm2, %v1584_v59  ;;  %2566 = vmatprep.mubr.msk.f32.mxu0 %vm2945_vm1, %v2944_v8 }
 0xc47   :  { %v1426_v4 = vmul.f32 %v2734_v3, %v2730_v57  ;;  %2574 = vmatprep.subr.mxu0 %v2944_v8 }
 0xc49   :  { %1428 = vst.msk [vmem:[#allocation14 + $0x10] sm:$0xff] %vm403_vm3, %v1426_v4  ;;  %2562 = vmatmul.mubr.msk.f32.vlgmr.msra.gmra.mrb[18].mxu1 %vm403_vm3, %v1426_v4  ;;  %2567 = vmatmul.mubr.msk.f32.vlgmr.msra.gmra.mrb[12].mxu0 %vm247_vm2, %v1582_v6 }
 0xc4a   :  { %2570 = vmatpush3.xpose.msk.msra.mxu1 %vm247_vm2, %v1662_v60  ;;  %2571 = vmatprep.mubr.msk.f32.mxu1 %vm2945_vm1, %v2944_v8 }
 0xc4b   :  { %2579 = vmatprep.subr.mxu1 %v2944_v8  ;;  %2576 = vmatprep.mubr.msk.f32.mxu0 %vm2945_vm1, %v2944_v8 }
 0xc4d   :  { %2572 = vmatmul.mubr.msk.f32.vlgmr.msra.gmra.mrb[20].mxu1 %vm247_vm2, %v1660_v9 }
 0xc4e   :  { %2581 = vmatprep.mubr.msk.f32.mxu1 %vm2945_vm1, %v2944_v8 }
 0xd18   :  { %v3397_v10 = vpop.f32.mrb[10].mxu0 }
 0xd19   :  { %v2558_v11 = vpop.f32.mrb[11].mxu0 }
 0xd1c   :  { %v3399_v15 = vpop.f32.mrb[18].mxu1  ;;  %v1655_v16 = vpop.f32.mrb[12].mxu0 }
 0xd1d   :  { %v1737_v18 = vmul.f32 0.25, %v1655_v16  ;;  %v2563_v19 = vpop.f32.mrb[19].mxu1  ;;  %v2568_v20 = vpop.f32.mrb[13].mxu0 }
 0xd1e   :  { %v2056_v19 = vld [vmem:[#allocation10 + $0x8] sm:$0xff] }
 0xd1f   :  { %v1739_v21 = vadd.f32 %v1737_v18, %v3357_v36 }
 0xd20   :  { %v1733_v22 = vpop.f32.mrb[20].mxu1 }
 0xd21   :  { %v1738_v23 = vmul.f32 0.25, %v1733_v22  ;;  %v2573_v12 = vpop.f32.mrb[21].mxu1  ;;  %v1741_v25 = vsel %vm403_vm3, %v1739_v21, -inf  ;;  %v2058_v22 = vld [vmem:[#allocation10 + $0x18] sm:$0xff] }
 0xd22   :  { %1742 = vmax.xlane.f32.xlu0 %v1741_v25  ;;  %v2149_v12 = vld [vmem:[%s3535_s14] sm:$0xff]  ;;  %v2150_v25 = vld [vmem:[%s3535_s14 + $0x8] sm:$0xff] }
 0xd23   :  { %v1740_v27 = vadd.f32 %v1738_v23, %v3360_v42 }
 0xd25   :  { %v1744_v8 = vsel %vm403_vm3, %v1740_v27, -inf }
 0xd26   :  { %1745 = vmax.xlane.f32.xlu1 %v1744_v8  ;;  %v2673_v8 = vpack.c.bf16 %v2150_v25, %v2149_v12 }
 0xd37   :  { %1766 = vrot.lane.b32.xlu1 %v3310_v2, %s2950_s27 }
 0xdaf   :  { %v1743_v28 = vpop.xlane.xlu0 %1742 }
 0xdb0   :  { %v1747_v29 = vsub.f32 %v1739_v21, %v1743_v28  ;;  %v2057_v21 = vld [vmem:[#allocation10 + $0x10] sm:$0xff]  ;;  %v2152_v28 = vld [vmem:[%s3535_s14 + $0x18] sm:$0xff] }
 0xdb1   :  { %v2669_v23 = vpack.c.bf16 %v2058_v22, %v2057_v21 }
 0xdb2   :  { %v1749_v30 = vmul.f32 1.442695, %v1747_v29 }
 0xdb3   :  { %v1746_v31 = vpop.xlane.xlu1 %1745 }
 0xdb4   :  { %2735 = vpow2.f32 %v1749_v30  ;;  %v1748_v32 = vsub.f32 %v1740_v27, %v1746_v31  ;;  %v2151_v27 = vld [vmem:[%s3535_s14 + $0x10] sm:$0xff]  ;;  %v2153_v30 = vld [vmem:[%s3535_s14 + $0x20] sm:$0xff]  ;;  %v2154_v31 = vld [vmem:[%s3535_s14 + $0x28] sm:$0xff] }
 0xdb5   :  { %v2677_v29 = vpack.c.bf16 %v2152_v28, %v2151_v27 }
 0xdb6   :  { %v1751_v33 = vmul.f32 1.442695, %v1748_v32  ;;  %v2681_v32 = vpack.c.bf16 %v2154_v31, %v2153_v30 }
 0xdb7   :  { %v1767_v34 = vpop.permute.xlu1 %1766 }
 0xdb8   :  { %2737 = vpow2.f32 %v1751_v33  ;;  %2575 = vmatpush3.msra.mxu0 %v1767_v34 }
 0xdbe   :  { %v2736_v35 = vpop.eup %2735 }
 0xdbf   :  { %v1753_v36 = vsel %vm403_vm3, %v2736_v35, 0.0 }
 0xdc0   :  { %1754 = vadd.xlane.f32.xlu0 %v1753_v36 }
 0xdc2   :  { %v2738_v37 = vpop.eup %2737 }
 0xdc3   :  { %v1756_v38 = vsel %vm403_vm3, %v2738_v37, 0.0 }
 0xdc4   :  { %1757 = vadd.xlane.f32.xlu0 %v1756_v38 }
 0xdda   :  { %1842 = vrot.lane.b32.xlu0 %v3308_v0, %s2950_s27  ;;  %v1061_v0 = vld [vmem:[#allocation8 + $0x8] sm:$0xff] }
 0xddb   :  { %v2657_v46 = vpack.c.bf16 %v1061_v0, %v1060_v45 }
 0xddd   :  { %2658 = vmatprep.subr.bf16.mxu0 %v2657_v46 }
 0xe4d   :  { %v1755_v2 = vpop.xlane.xlu0 %1754 }
 0xe4e   :  { %2739 = vrcp.f32 %v1755_v2  ;;  %v2045_v2 = vsub.s32 1, %v3316_v14 }
 0xe51   :  { %v1758_v39 = vpop.xlane.xlu0 %1757 }
 0xe52   :  { %2741 = vrcp.f32 %v1758_v39  ;;  %v2046_v39 = vrot.slane %v3322_v17, %v2045_v2 }
 0xe55   :  { %v1843_v40 = vpop.permute.xlu0 %1842 }
 0xe56   :  { %2580 = vmatpush3.msra.mxu1 %v1843_v40 }
 0xe58   :  { %v2740_v41 = vpop.eup %2739 }
 0xe59   :  { %v1761_v42 = vmul.f32 %v2740_v41, %v2736_v35 }
 0xe5b   :  { %1764 = vst.msk [vmem:[#allocation14 + $0x8] sm:$0xff] %vm403_vm3, %v1761_v42  ;;  %2577 = vmatmul.mubr.msk.f32.vlgmr.msra.gmra.mrb[14].mxu0 %vm403_vm3, %v1761_v42  ;;  %v2052_v42 = vrot.slane %v3327_v13, %v2045_v2 }
 0xe5c   :  { %v2742_v43 = vpop.eup %2741  ;;  %2660 = vmatpush3.bf16.msra.mxu0 %v2657_v46 }
 0xe5d   :  { %v1762_v44 = vmul.f32 %v2742_v43, %v2738_v37  ;;  %2662 = vmatprep.subr.bf16.mxu0 %v2661_v48 }
 0xe5f   :  { %1765 = vst.msk [vmem:[#allocation14 + $0x18] sm:$0xff] %vm403_vm3, %v1762_v44  ;;  %2582 = vmatmul.mubr.msk.f32.vlgmr.msra.gmra.mrb[22].mxu1 %vm403_vm3, %v1762_v44 }
 0xe60   :  { %2664 = vmatpush3.bf16.msra.mxu0 %v2661_v48  ;;  %v2156_v48 = vld [vmem:[%s3535_s14 + $0x38] sm:$0xff] }
 0xe61   :  { %2674 = vmatprep.subr.bf16.mxu0 %v2673_v8 }
 0xf2e   :  { %v1838_v5 = vpop.f32.mrb[14].mxu0 }
 0xf2f   :  { %1920 = vrot.lane.b32.xlu1 %v1838_v5, %s2951_s22  ;;  %v2578_v49 = vpop.f32.mrb[15].mxu0  ;;  %v2685_v5 = vpack.c.bf16 %v2156_v48, %v2155_v7 }
 0xf30   :  { %v2376_v49 = vld [vmem:[%s3534_s13] ss:$0 sm:$0xff]  ;;  %s2952_s13 = smov [#allocation12]  }
 0xf31   :  { %s2305_s14 = sshll.u32 %s2952_s13, 4  ;;  %s2306_s14 = int_to_ptr.vmem [resolvable:$true] %s2305_s14 }
 0xf32   :  { %v1914_v50 = vpop.f32.mrb[22].mxu1  ;;  %p2866_p13 = scmp.lt.s32.totalorder %s2306_s14, %s2306_s14 }
 0xf33   :  { %1922 = vrot.lane.b32.xlu1 %v1914_v50, %s2951_s22  ;;  %v2583_v51 = vpop.f32.mrb[23].mxu1 }
 0xfa1   :  { %v1921_v52 = vpop.permute.xlu1 %1920 }
 0xfa2   :  { %v1926_v53 = vsel %vm247_vm2, %v3397_v10, %v1921_v52 }
 0xfa3   :  { %2592 = vmatprep.mubr.msk.f32.mxu0 %vm162_vm0, %v1926_v53 }
 0xfa5   :  { %v1923_v54 = vpop.permute.xlu1 %1922 }
 0xfa6   :  { %v1927_v55 = vsel %vm247_vm2, %v3399_v15, %v1923_v54 }
 0xfa7   :  { %2593 = vmatmul.mubr.msk.f32.vlgmr.msra.gmra.mrb[16].mxu0 %vm162_vm0, %v1927_v55 }
 0xfa8   :  { %2676 = vmatpush3.bf16.msra.mxu0 %v2673_v8 }
 0xfa9   :  { %2678 = vmatprep.subr.bf16.mxu0 %v2677_v29 }
 0xfac   :  { %2680 = vmatpush3.bf16.msra.mxu0 %v2677_v29 }
 0xfad   :  { %2682 = vmatprep.subr.bf16.mxu0 %v2681_v32 }
 0xfb0   :  { %2684 = vmatpush3.bf16.msra.mxu0 %v2681_v32 }
 0xfb1   :  { %2686 = vmatprep.subr.bf16.mxu0 %v2685_v5 }
 0xfb4   :  { %2688 = vmatpush3.bf16.msra.mxu0 %v2685_v5 }
0x107a   :  { %v2594_v57 = vpop.f32.mrb[16].mxu0 }
0x107b   :  { %v2012_v58 = vadd.f32 %v2594_v57, %v2373_v56  ;;  %v2006_v59 = vpop.f32.mrb[17].mxu0 }
0x107c   :  { %v2007_v60 = vadd.f32 %v2373_v56, %v2006_v59  ;;  %v2379_v56 = vld [vmem:[%s3536_s15] ss:$0 sm:$0xff]  ;;  %s2861_s15 = scalar_lea.vmem %s2306_s14, 512 }
0x107d   :  { %v2016_v61 = vadd.f32 %v2012_v58, %v3335_v26  ;;  %p2862_p12 = scmp.ne.s32.totalorder %s2306_s14, %s2861_s15  ;;  %p2867_p0 = scmp.lt.s32.totalorder %s2861_s15, %s2861_s15 }
0x107e   :  { %v2015_v62 = vadd.f32 %v2007_v60, %v3331_v24  ;;  %v2055_v24 = vld [vmem:[#allocation10] sm:$0xff] }
0x107f   :  { %v2020_v63 = vsel %vm162_vm0, %v2016_v61, 0.0  ;;  %v2665_v20 = vpack.c.bf16 %v2056_v19, %v2055_v24  ;;  %p2868_p1 = por %p2867_p0, %p2866_p13 }
0x1080   :  { %2021 = vadd.xlane.f32.xlu1 %v2020_v63  ;;  %v2017_v1 = vsel %vm162_vm0, %v2015_v62, 0.0 }
0x1081   :  { %2018 = vadd.xlane.f32.xlu0 %v2017_v1  ;;  %2666 = vmatprep.subr.bf16.mxu1 %v2665_v20  ;;  %p2869_p2 = pnand %p2868_p1, %p2862_p12 }
0x1082   :  { %2668 = vmatpush3.bf16.msra.mxu1 %v2665_v20 }
0x1083   :  { %2670 = vmatprep.subr.bf16.mxu1 %v2669_v23 }
0x1086   :  { %2672 = vmatpush3.bf16.msra.mxu1 %v2669_v23 }
0x110d   :  { %v2022_v3 = vpop.xlane.xlu1 %2021 }
0x110e   :  { %v2024_v4 = vmul.f32 0.03125, %v2022_v3  ;;  %v2019_v6 = vpop.xlane.xlu0 %2018 }
0x110f   :  { %v2023_v9 = vmul.f32 0.03125, %v2019_v6 }
0x1110   :  { %v2026_v10 = vsub.f32 %v2016_v61, %v2024_v4 }
0x1111   :  { %v2025_v11 = vsub.f32 %v2015_v62, %v2023_v9 }
0x1112   :  { %v2028_v18 = vmul.f32 %v2026_v10, %v2026_v10 }
0x1113   :  { %v2027_v15 = vmul.f32 %v2025_v11, %v2025_v11 }
0x1114   :  { %v2032_v26 = vsel %vm162_vm0, %v2028_v18, 0.0 }
0x1115   :  { %v2029_v16 = vsel %vm162_vm0, %v2027_v15, 0.0 }
0x1116   :  { %2030 = vadd.xlane.f32.xlu0 %v2029_v16 }
0x111a   :  { %2033 = vadd.xlane.f32.xlu0 %v2032_v26 }
0x11a3   :  { %v2031_v33 = vpop.xlane.xlu0 %2030 }
0x11a4   :  { %v2035_v34 = vmul.f32 0.03125, %v2031_v33 }
0x11a6   :  { %v2037_v35 = vadd.f32 1e-06, %v2035_v34 }
0x11a7   :  { %v2034_v36 = vpop.xlane.xlu0 %2033 }
0x11a8   :  { %2743 = vrsqrt.f32 %v2037_v35  ;;  %v2036_v37 = vmul.f32 0.03125, %v2034_v36 }
0x11aa   :  { %v2038_v38 = vadd.f32 1e-06, %v2036_v37 }
0x11ac   :  { %2745 = vrsqrt.f32 %v2038_v38 }
0x11b2   :  { %v2744_v40 = vpop.eup %2743 }
0x11b3   :  { %v2041_v41 = vmul.f32 %v2744_v40, %v2025_v11 }
0x11b5   :  { %v2047_v43 = vmul.f32 %v2046_v39, %v2041_v41 }
0x11b6   :  { %v2746_v44 = vpop.eup %2745 }
0x11b7   :  { %v2042_v45 = vmul.f32 %v2746_v44, %v2026_v10  ;;  %v2053_v0 = vadd.f32 %v2052_v42, %v2047_v43 }
0x11b9   :  { %v2048_v46 = vmul.f32 %v2046_v39, %v2042_v45  ;;  %2603 = vmatprep.mubr.msk.f32.mxu1 %vm162_vm0, %v2053_v0 }
0x11bb   :  { %v2054_v47 = vadd.f32 %v2052_v42, %v2048_v46 }
0x11bd   :  { %2604 = vmatmul.mubr.msk.f32.vlgmr.msra.gmra.mrb[24].mxu1 %vm162_vm0, %v2054_v47 }
0x1290   :  { %v2605_v50 = vpop.f32.mrb[24].mxu1 }
0x1291   :  { %v2144_v51 = vadd.f32 %v2605_v50, %v2376_v49  ;;  %v2138_v52 = vpop.f32.mrb[25].mxu1 }
0x1292   :  { %v2139_v53 = vadd.f32 %v2376_v49, %v2138_v52 }
0x1293   :  { %v2148_v55 = vmax.f32 %v2144_v51, 0.0 }
0x1294   :  { %v2147_v54 = vmax.f32 %v2139_v53, 0.0 }
0x1296   :  { %2622 = vmatprep.mubr.msk.f32.mxu0 %vm2164_vm4, %v2147_v54 }
0x1297   :  { %2623 = vmatmul.mubr.msk.f32.vlgmr.msra.gmra.mrb[18].mxu0 %vm2164_vm4, %v2148_v55 }
0x136a   :  { %v2624_v57 = vpop.f32.mrb[18].mxu0 }
0x136b   :  { %v2243_v58 = vadd.f32 %v2624_v57, %v2379_v56  ;;  %v2237_v59 = vpop.f32.mrb[19].mxu0 }
0x136c   :  { %v2238_v60 = vadd.f32 %v2379_v56, %v2237_v59 }
0x136d   :  { %v2247_v61 = vadd.f32 %v2243_v58, %v2054_v47 }
0x136e   :  { %v2246_v62 = vadd.f32 %v2238_v60, %v2053_v0 }
0x136f   :  { %v2251_v63 = vsel %vm162_vm0, %v2247_v61, 0.0 }
0x1370   :  { %2252 = vadd.xlane.f32.xlu0 %v2251_v63  ;;  %v2248_v1 = vsel %vm162_vm0, %v2246_v62, 0.0 }
0x1371   :  { %2249 = vadd.xlane.f32.xlu1 %v2248_v1 }
0x13fd   :  { %v2253_v3 = vpop.xlane.xlu0 %2252 }
0x13fe   :  { %v2255_v4 = vmul.f32 0.03125, %v2253_v3  ;;  %v2250_v6 = vpop.xlane.xlu1 %2249 }
0x13ff   :  { %v2254_v9 = vmul.f32 0.03125, %v2250_v6 }
0x1400   :  { %v2257_v10 = vsub.f32 %v2247_v61, %v2255_v4 }
0x1401   :  { %v2256_v11 = vsub.f32 %v2246_v62, %v2254_v9 }
0x1402   :  { %v2259_v15 = vmul.f32 %v2257_v10, %v2257_v10 }
0x1403   :  { %v2258_v16 = vmul.f32 %v2256_v11, %v2256_v11 }
0x1404   :  { %v2263_v18 = vsel %vm162_vm0, %v2259_v15, 0.0 }
0x1405   :  { %2264 = vadd.xlane.f32.xlu0 %v2263_v18  ;;  %v2260_v26 = vsel %vm162_vm0, %v2258_v16, 0.0 }
0x1406   :  { %2261 = vadd.xlane.f32.xlu1 %v2260_v26 }
0x1407   :  { %2872 = shalt.err (!%p2869_p2)
}
0x1408   :  { %s2873_s12 = scalar_lea.hbm %s3540_s19, 512 }
0x1409   :  { %p2874_p3 = scmp.ne.s32.totalorder %s3540_s19, %s2873_s12  ;;  %p2877_p4 = scmp.lt.u32.totalorder %s2873_s12, %s3540_s19 }
0x140b   :  { %p2879_p5 = pnand %p2877_p4, %p2874_p3 }
0x140d   :  { %2882 = shalt.err (!%p2879_p5)
}
0x140e   :  { %2311 = dma.vmem_to_hbm [thread:$0]  %s2306_s14, 512, %s3540_s19, [#allocation13], %s2939_s0, %s2939_s0, %s2940_s21  }
0x140f   :  { %s2953_s10 = smov [#allocation14]  }
0x1410   :  { %s2317_s3 = sshll.u32 %s2953_s10, 4  ;;  %s2318_s3 = int_to_ptr.vmem [resolvable:$true] %s2317_s3 }
0x1411   :  { %s2883_s1 = scalar_lea.vmem %s2318_s3, 512  ;;  %p2888_p7 = scmp.lt.s32.totalorder %s2318_s3, %s2318_s3 }
0x1412   :  { %p2884_p6 = scmp.ne.s32.totalorder %s2318_s3, %s2883_s1  ;;  %p2889_p8 = scmp.lt.s32.totalorder %s2883_s1, %s2883_s1 }
0x1414   :  { %p2890_p9 = por %p2889_p8, %p2888_p7 }
0x1416   :  { %p2891_p10 = pnand %p2890_p9, %p2884_p6 }
0x1418   :  { %2894 = shalt.err (!%p2891_p10)
}
0x1419   :  { %s3561_s18 = sld [smem:[#allocation26_spill]] }
0x141f   :  { %s2895_s4 = scalar_lea.hbm %s3561_s18, 512 }
0x1420   :  { %p2896_p11 = scmp.ne.s32.totalorder %s3561_s18, %s2895_s4  ;;  %p2899_p12 = scmp.lt.u32.totalorder %s2895_s4, %s3561_s18 }
0x1422   :  { %p2901_p13 = pnand %p2899_p12, %p2896_p11 }
0x1424   :  { %2904 = shalt.err (!%p2901_p13)
}
0x1425   :  { %2323 = dma.vmem_to_hbm [thread:$0]  %s2318_s3, 512, %s3561_s18, [#allocation13], %s2939_s0, %s2939_s0, %s2940_s21   ;;  %v2276_v12 = vsub.s32 2, %v3316_v14 }
0x1426   :  { %s2954_s30 = smov [#allocation11]  }
0x1427   :  { %v2277_v25 = vrot.slane %v3322_v17, %v2276_v12  ;;  %v2283_v29 = vrot.slane %v3327_v13, %v2276_v12  ;;  %s2293_s20 = sshll.u32 %s2954_s30, 4  ;;  %s2294_s20 = int_to_ptr.vmem [resolvable:$true] %s2293_s20 }
0x1428   :  { %s2905_s16 = scalar_lea.vmem %s2294_s20, 256  ;;  %p2910_p1 = scmp.lt.s32.totalorder %s2294_s20, %s2294_s20 }
0x1429   :  { %p2906_p0 = scmp.ne.s32.totalorder %s2294_s20, %s2905_s16  ;;  %p2911_p2 = scmp.lt.s32.totalorder %s2905_s16, %s2905_s16 }
0x142b   :  { %p2912_p3 = por %p2911_p2, %p2910_p1 }
0x142d   :  { %p2913_p4 = pnand %p2912_p3, %p2906_p0 }
0x1492   :  { %v2265_v24 = vpop.xlane.xlu0 %2264 }
0x1493   :  { %v2267_v19 = vmul.f32 0.03125, %v2265_v24  ;;  %v2262_v20 = vpop.xlane.xlu1 %2261 }
0x1494   :  { %v2266_v21 = vmul.f32 0.03125, %v2262_v20 }
0x1495   :  { %v2269_v22 = vadd.f32 1e-06, %v2267_v19 }
0x1496   :  { %v2268_v23 = vadd.f32 1e-06, %v2266_v21 }
0x1497   :  { %2747 = vrsqrt.f32 %v2269_v22 }
0x1498   :  { %2749 = vrsqrt.f32 %v2268_v23 }
0x14a1   :  { %v2748_v27 = vpop.eup %2747 }
0x14a2   :  { %v2750_v8 = vpop.eup %2749  ;;  %v2273_v28 = vmul.f32 %v2748_v27, %v2257_v10 }
0x14a3   :  { %v2272_v30 = vmul.f32 %v2750_v8, %v2256_v11 }
0x14a4   :  { %v2279_v31 = vmul.f32 %v2277_v25, %v2273_v28 }
0x14a5   :  { %v2278_v32 = vmul.f32 %v2277_v25, %v2272_v30 }
0x14a6   :  { %v2285_v33 = vadd.f32 %v2283_v29, %v2279_v31 }
0x14a7   :  { %v2284_v34 = vadd.f32 %v2283_v29, %v2278_v32 }
0x14a8   :  { %2287 = vst.msk [vmem:[#allocation11 + $0x8] sm:$0xff] %vm162_vm0, %v2285_v33 }
0x14a9   :  { %2286 = vst.msk [vmem:[#allocation11] sm:$0xff] %vm162_vm0, %v2284_v34 }
0x14aa   :  { %2916 = shalt.err (!%p2913_p4)
}
0x14ab   :  { %s3562_s14 = sld [smem:[#allocation25_spill]] }
0x14b1   :  { %s2917_s15 = scalar_lea.hbm %s3562_s14, 256 }
0x14b2   :  { %p2918_p5 = scmp.ne.s32.totalorder %s3562_s14, %s2917_s15  ;;  %p2921_p6 = scmp.lt.u32.totalorder %s2917_s15, %s3562_s14 }
0x14b4   :  { %p2923_p7 = pnand %p2921_p6, %p2918_p5 }
0x14b6   :  { %2926 = shalt.err (!%p2923_p7)
}
0x14b7   :  { %2299 = dma.vmem_to_hbm [thread:$0]  %s2294_s20, 256, %s3562_s14, [#allocation4], %s2939_s0, %s2939_s0, %s2940_s21  }
0x14b8   :  { %2933 = dma.done.wait [#allocation4], 256  }
0x14b9   :  { %2934 = vsyncadd [#allocation4], 4294967040 }
0x14ba   :  { %2935 = dma.done.wait [#allocation13], 1024  }
0x14bb   :  { %2936 = vsyncadd [#allocation13], 4294966272 }
0x14bc   :  { %2333 = vsyncpa [#allocation3], 1 }
0x14bd   :  { %2334 = vsyncpa [#allocation6], 1 }
0x14be   :  { %2335 = vsyncpa [#allocation9], 1 }
0x14bf   :  { %2336 = vsyncpa [#allocation4], 1 }
0x14c0   :  { %2337 = vsyncpa [#allocation13], 1 }

</bundles_post_ra>
